<compile_context>
chip_gen: v7x
topology: tpu7x:2x2x1
jax: 0.10.0
libtpu: 0.0.40
codegen_flags: <defaults>
</compile_context>

<pallas_src>
import math
from functools import partial

import jax
import jax.numpy as jnp
from jax.experimental import pallas as pl
from jax.experimental.pallas import tpu as pltpu


# ----------------------- generation-aware sizing helpers -----------------------

def _tpu_limits():
    """Return (vmem_limit_bytes, target_matmul_rows) for the current TPU."""
    vmem_limit = 48 * 1024 * 1024          # safe everywhere (v7x has 64 MiB/TC)
    target_rows = 256                      # v6e/v7x MXU is 256 rows tall
    try:
        cap = pltpu.get_tpu_info().vmem_capacity_bytes
        if cap >= 96 * 1024 * 1024:        # v5e / v6e: 128 MiB physical per TC
            vmem_limit = 100 * 1024 * 1024
        else:                              # v7x-class: 64 MiB physical per TC
            vmem_limit = 48 * 1024 * 1024
    except Exception:
        pass
    try:
        kind = jax.devices()[0].device_kind.lower()
        if ("v5 lite" in kind) or ("v5e" in kind) or ("v5lite" in kind):
            target_rows = 128              # v5e MXU is only 128 rows tall
    except Exception:
        pass
    return vmem_limit, target_rows


def _pick_batch_tile(B, T, target_rows):
    # Fold enough sequences into one grid step that M = TB*T reaches the MXU
    # height, but keep >= 2 steps on the parallel batch axis so both v7x
    # TensorCores get work and the activation pipeline has something to overlap.
    tb = min(B, max(1, -(-target_rows // T)))
    if B >= 2:
        tb = min(tb, max(1, B // 2))
    while B % tb:
        tb -= 1
    return tb


# ------------------------------- kernel helpers -------------------------------

def _layernorm(x, w, b, eps):
    mu = jnp.mean(x, axis=-1, keepdims=True)
    xc = x - mu
    var = jnp.mean(xc * xc, axis=-1, keepdims=True)
    return xc * jax.lax.rsqrt(var + eps) * w + b


def _erf(x):
    # Abramowitz & Stegun 7.1.26 (max abs err ~1.5e-7).  Uses only exp/VPU ops
    # so it lowers in Mosaic without relying on a lax.erf lowering rule.
    a1, a2, a3, a4, a5 = 0.254829592, -0.284496736, 1.421413741, -1.453152027, 1.061405429
    p = 0.3275911
    ax = jnp.abs(x)
    t = 1.0 / (1.0 + p * ax)
    poly = ((((a5 * t + a4) * t + a3) * t + a2) * t + a1) * t
    y = 1.0 - poly * jnp.exp(-ax * ax)
    return jnp.where(x >= 0, y, -y)


def _gelu_exact(x):
    # matches torch.nn.GELU() (erf formulation)
    return 0.5 * x * (1.0 + _erf(x * (1.0 / math.sqrt(2.0))))


# ------------------------------ fused torso kernel ------------------------------

def gpt2_torso_kernel(x_ref,
                      ln1_w_ref, ln1_b_ref,
                      w_qkv_ref, b_qkv_ref,
                      w_proj_ref, b_proj_ref,
                      ln2_w_ref, ln2_b_ref,
                      w_fc_ref, b_fc_ref,
                      w_fc2_ref, b_fc2_ref,
                      lnf_w_ref, lnf_b_ref,
                      o_ref, resid_ref,
                      *, num_heads, eps, q_tile, kv_tile, mlp_chunk):
    TB, T, C = x_ref.shape
    H = num_heads
    hd = C // H
    M = TB * T
    N = TB * H                             # attention batch (sequences x heads)
    scale = 1.0 / math.sqrt(hd)
    layer = pl.program_id(1)

    # Layer 0 of this batch block: load the embeddings into the VMEM-resident
    # residual stream (it never round-trips HBM between layers).
    @pl.when(layer == 0)
    def _():
        resid_ref[...] = x_ref[...].reshape(M, C)

    x = resid_ref[...]

    # ---- ln_1 + fused QKV projection: one (M, C) @ (C, 3C) bf16 MXU matmul ----
    h = _layernorm(x, ln1_w_ref[...], ln1_b_ref[...], eps)
    qkv = jnp.dot(h.astype(jnp.bfloat16), w_qkv_ref[...],
                  preferred_element_type=jnp.float32) + b_qkv_ref[...]

    # ---- head split: one lane-split reshape + one layout-aware einshape.
    # torch's qkv/proj column/row layouts are already head-contiguous, so no
    # host-side weight permutation is needed (replaces per-head slice+concat).
    def split_heads(slab):                              # (M, C) -> (H*TB, T, hd)
        t3 = slab.reshape(M, H, hd)
        t3 = pltpu.einshape("mhd->hmd", t3)             # (H, M, hd)
        return t3.reshape(N, T, hd)

    q = split_heads(qkv[:, :C] * scale).astype(jnp.bfloat16)
    k = split_heads(qkv[:, C:2 * C]).astype(jnp.bfloat16)
    v = split_heads(qkv[:, 2 * C:]).astype(jnp.bfloat16)

    # ---- causal flash attention: online softmax over KV tiles; fully masked
    # tiles are skipped and the (T, T) score matrix is never materialized ----
    nq = T // q_tile
    o_tiles = []
    for qi in range(nq):
        q_t = q[:, qi * q_tile:(qi + 1) * q_tile, :]             # (N, QT, hd)
        m_i = jnp.full((N, q_tile, 1), -1e30, jnp.float32)
        l_i = jnp.zeros((N, q_tile, 1), jnp.float32)
        acc = jnp.zeros((N, q_tile, hd), jnp.float32)
        n_kv = ((qi + 1) * q_tile - 1) // kv_tile + 1            # skip tiles past diag
        for ki in range(n_kv):
            k_t = k[:, ki * kv_tile:(ki + 1) * kv_tile, :]
            v_t = v[:, ki * kv_tile:(ki + 1) * kv_tile, :]
            s = jnp.einsum("bqd,bkd->bqk", q_t, k_t,
                           preferred_element_type=jnp.float32)   # (N, QT, KT)
            if (ki + 1) * kv_tile - 1 > qi * q_tile:             # straddles diagonal
                rows = jax.lax.broadcasted_iota(jnp.int32, (q_tile, kv_tile), 0) + qi * q_tile
                cols = jax.lax.broadcasted_iota(jnp.int32, (q_tile, kv_tile), 1) + ki * kv_tile
                s = jnp.where((rows >= cols)[None, :, :], s, -1e30)
            m_new = jnp.maximum(m_i, jnp.max(s, axis=-1, keepdims=True))
            alpha = jnp.exp(m_i - m_new)
            p = jnp.exp(s - m_new)
            l_i = alpha * l_i + jnp.sum(p, axis=-1, keepdims=True)
            acc = alpha * acc + jnp.einsum("bqk,bkd->bqd", p.astype(jnp.bfloat16),
                                           v_t, preferred_element_type=jnp.float32)
            m_i = m_new
        o_tiles.append(acc * pl.reciprocal(l_i, approx=True))
    o_heads = o_tiles[0] if nq == 1 else jnp.concatenate(o_tiles, axis=1)  # (N, T, hd)

    # ---- head merge (inverse of split) + full-width output projection ----
    y = pltpu.einshape("hmd->mhd", o_heads.reshape(H, M, hd)).reshape(M, C)
    attn = jnp.dot(y.astype(jnp.bfloat16), w_proj_ref[...],
                   preferred_element_type=jnp.float32) + b_proj_ref[...]
    x = x + attn

    # ---- ln_2 + MLP (exact erf-GELU); 4C axis processed in chunks so the
    # (M, 4C) f32 intermediate is never fully live (helps v7x VMEM) ----
    h2 = _layernorm(x, ln2_w_ref[...], ln2_b_ref[...], eps).astype(jnp.bfloat16)
    F4 = 4 * C
    mlp = jnp.zeros((M, C), jnp.float32)
    for j in range(F4 // mlp_chunk):
        lo, hi = j * mlp_chunk, (j + 1) * mlp_chunk
        f = jnp.dot(h2, w_fc_ref[:, lo:hi],
                    preferred_element_type=jnp.float32) + b_fc_ref[:, lo:hi]
        f = _gelu_exact(f)
        mlp = mlp + jnp.dot(f.astype(jnp.bfloat16), w_fc2_ref[lo:hi, :],
                            preferred_element_type=jnp.float32)
    # TODO(synk): at gpt2-large/xl sizes on v7x, also tile w_fc / w_fc2 residency
    # (extra grid axis or manual DMA) so the 4C weights are never fully in VMEM.
    x = x + mlp + b_fc2_ref[...]
    resid_ref[...] = x

    # ---- last layer: fused final LayerNorm + single lane-dense writeback ----
    @pl.when(layer == pl.num_programs(1) - 1)
    def _():
        o_ref[...] = _layernorm(x, lnf_w_ref[...], lnf_b_ref[...],
                                eps).reshape(TB, T, C)


# ------------------------------- params & forward -------------------------------

def init_params(key, *, num_layers, hidden, vocab_size, block_size):
    std = 0.02
    proj_std = 0.02 / math.sqrt(2 * num_layers)
    C, F4, L = hidden, 4 * hidden, num_layers
    k_wte, k_wpe, k_qkv, k_proj, k_fc, k_fc2 = jax.random.split(key, 6)
    nrm = lambda k, shape, s, dt: (s * jax.random.normal(k, shape)).astype(dt)
    return {
        "wte": nrm(k_wte, (vocab_size, C), std, jnp.float32),
        "wpe": nrm(k_wpe, (block_size, C), std, jnp.float32),
        # per-layer parameters stacked on a leading layer axis
        "ln1_w": jnp.ones((L, 1, C), jnp.float32),
        "ln1_b": jnp.zeros((L, 1, C), jnp.float32),
        "ln2_w": jnp.ones((L, 1, C), jnp.float32),
        "ln2_b": jnp.zeros((L, 1, C), jnp.float32),
        # Linear weights stored [in, out] (transposed vs torch) in bf16.
        "w_qkv": nrm(k_qkv, (L, C, 3 * C), std, jnp.bfloat16),
        "b_qkv": jnp.zeros((L, 1, 3 * C), jnp.float32),
        "w_proj": nrm(k_proj, (L, C, C), proj_std, jnp.bfloat16),   # c_proj init
        "b_proj": jnp.zeros((L, 1, C), jnp.float32),
        "w_fc": nrm(k_fc, (L, C, F4), std, jnp.bfloat16),
        "b_fc": jnp.zeros((L, 1, F4), jnp.float32),
        "w_fc2": nrm(k_fc2, (L, F4, C), proj_std, jnp.bfloat16),    # c_proj init
        "b_fc2": jnp.zeros((L, 1, C), jnp.float32),
        "ln_f_w": jnp.ones((1, C), jnp.float32),
        "ln_f_b": jnp.zeros((1, C), jnp.float32),
    }


def gpt2_torso_forward(params, token_ids, *, num_heads, eps):
    B, T = token_ids.shape
    wpe = params["wpe"]
    assert T <= wpe.shape[0], "sequence longer than block_size"
    C = params["wte"].shape[1]
    L = params["w_qkv"].shape[0]
    F4 = 4 * C

    vmem_limit, target_rows = _tpu_limits()
    TB = _pick_batch_tile(B, T, target_rows)
    q_tile = math.gcd(T, 256)
    kv_tile = math.gcd(T, 512)
    mlp_chunk = math.gcd(F4, 2048)

    # Token + position embedding (pure gather; kept in plain JAX/XLA).
    x = (params["wte"][token_ids] + wpe[:T][None, :, :]).astype(jnp.float32)
    # TODO(synk): embed/attn/resid dropouts are p=0.0 in this config (identity);
    # the optional attn_mask argument is not supported (causal-only path).

    def layer_spec(*tail):
        # per-layer weight block: layer dim squeezed, indexed by the layer axis,
        # so default double-buffering prefetches layer l+1 while computing l.
        n = len(tail)
        return pl.BlockSpec((None,) + tuple(tail), lambda b, l, _n=n: (l,) + (0,) * _n)

    # Grid-constant inputs: only the two ~512 B ln_f vectors remain constant in
    # the fused design, so double-buffering them costs nothing worth optimizing.
    const_spec = lambda r, c: pl.BlockSpec((r, c), lambda b, l: (0, 0))

    kernel = partial(gpt2_torso_kernel, num_heads=num_heads, eps=eps,
                     q_tile=q_tile, kv_tile=kv_tile, mlp_chunk=mlp_chunk)

    return pl.pallas_call(
        kernel,
        out_shape=jax.ShapeDtypeStruct((B, T, C), jnp.float32),
        grid=(B // TB, L),
        in_specs=[
            pl.BlockSpec((TB, T, C), lambda b, l: (b, 0, 0)),     # embeddings
            layer_spec(1, C), layer_spec(1, C),                   # ln1 w, b
            layer_spec(C, 3 * C), layer_spec(1, 3 * C),           # qkv W, b
            layer_spec(C, C), layer_spec(1, C),                   # proj W, b
            layer_spec(1, C), layer_spec(1, C),                   # ln2 w, b
            layer_spec(C, F4), layer_spec(1, F4),                 # fc W, b
            layer_spec(F4, C), layer_spec(1, C),                  # fc2 W, b
            const_spec(1, C), const_spec(1, C),                   # ln_f w, b
        ],
        out_specs=pl.BlockSpec((TB, T, C), lambda b, l: (b, 0, 0)),
        scratch_shapes=[pltpu.VMEM((TB * T, C), jnp.float32)],    # resident residual
        compiler_params=pltpu.CompilerParams(
            dimension_semantics=("parallel", "arbitrary"),
            vmem_limit_bytes=vmem_limit),
    )(x,
      params["ln1_w"], params["ln1_b"], params["w_qkv"], params["b_qkv"],
      params["w_proj"], params["b_proj"], params["ln2_w"], params["ln2_b"],
      params["w_fc"], params["b_fc"], params["w_fc2"], params["b_fc2"],
      params["ln_f_w"], params["ln_f_b"])


# ------------------------------ pure-JAX reference ------------------------------

def _ref_forward(params, token_ids, *, num_heads, eps):
    B, T = token_ids.shape
    C = params["wte"].shape[1]
    L = params["w_qkv"].shape[0]
    hd = C // num_heads
    x = params["wte"][token_ids] + params["wpe"][:T][None]
    f32 = lambda a: a.astype(jnp.float32)

    def ln(h, w, b):
        mu = h.mean(-1, keepdims=True)
        var = ((h - mu) ** 2).mean(-1, keepdims=True)
        return (h - mu) / jnp.sqrt(var + eps) * w + b

    for li in range(L):
        h = ln(x, params["ln1_w"][li], params["ln1_b"][li])
        qkv = h @ f32(params["w_qkv"][li]) + params["b_qkv"][li]
        q, k, v = jnp.split(qkv, 3, axis=-1)
        rs = lambda a: a.reshape(B, T, num_heads, hd).transpose(0, 2, 1, 3)
        q, k, v = rs(q), rs(k), rs(v)
        s = jnp.einsum("bhqd,bhkd->bhqk", q, k) / math.sqrt(hd)
        mask = jnp.tril(jnp.ones((T, T), bool))
        s = jnp.where(mask, s, -jnp.inf)
        a = jax.nn.softmax(s, axis=-1)
        y = jnp.einsum("bhqk,bhkd->bhqd", a, v).transpose(0, 2, 1, 3).reshape(B, T, C)
        x = x + y @ f32(params["w_proj"][li]) + params["b_proj"][li]
        h2 = ln(x, params["ln2_w"][li], params["ln2_b"][li])
        f = h2 @ f32(params["w_fc"][li]) + params["b_fc"][li]
        f = 0.5 * f * (1.0 + jax.lax.erf(f / math.sqrt(2.0)))
        x = x + f @ f32(params["w_fc2"][li]) + params["b_fc2"][li]
    return ln(x, params["ln_f_w"], params["ln_f_b"])


# --------------------------------------- main ---------------------------------------

if __name__ == "__main__":
    # Small synthetic GPT-2-style config (same structure, reduced sizes; hd=64
    # matches the real GPT-2 head dim).
    NUM_LAYERS = 2
    NUM_HEADS = 2
    HIDDEN = 128
    VOCAB = 512
    BLOCK_SIZE = 64
    EPS = 1e-5
    B, T = 2, 16

    key = jax.random.PRNGKey(0)
    pkey, dkey = jax.random.split(key)
    params = init_params(pkey, num_layers=NUM_LAYERS, hidden=HIDDEN,
                         vocab_size=VOCAB, block_size=BLOCK_SIZE)
    token_ids = jax.random.randint(dkey, (B, T), 0, VOCAB, dtype=jnp.int32)

    out = gpt2_torso_forward(params, token_ids, num_heads=NUM_HEADS, eps=EPS)
    out = jax.block_until_ready(out)
    assert out.shape == (B, T, HIDDEN) and out.dtype == jnp.float32

    ref = _ref_forward(params, token_ids, num_heads=NUM_HEADS, eps=EPS)
    assert jnp.allclose(out, ref, atol=2e-2, rtol=2e-2), "mismatch vs reference"

    print("KERNEL_OK")
</pallas_src>

<mosaic_0001>
module attributes {stable_mosaic.version = 11 : i64} {
  func.func @gpt2_torso_kernel(%arg0: i32, %arg1: i32, %arg2: memref<1x16x128xf32, #tpu.memory_space<vmem>>, %arg3: memref<1x1x128xf32, #tpu.memory_space<vmem>>, %arg4: memref<1x1x128xf32, #tpu.memory_space<vmem>>, %arg5: memref<1x128x384xbf16, #tpu.memory_space<vmem>>, %arg6: memref<1x1x384xf32, #tpu.memory_space<vmem>>, %arg7: memref<1x128x128xbf16, #tpu.memory_space<vmem>>, %arg8: memref<1x1x128xf32, #tpu.memory_space<vmem>>, %arg9: memref<1x1x128xf32, #tpu.memory_space<vmem>>, %arg10: memref<1x1x128xf32, #tpu.memory_space<vmem>>, %arg11: memref<1x128x512xbf16, #tpu.memory_space<vmem>>, %arg12: memref<1x1x512xf32, #tpu.memory_space<vmem>>, %arg13: memref<1x512x128xbf16, #tpu.memory_space<vmem>>, %arg14: memref<1x1x128xf32, #tpu.memory_space<vmem>>, %arg15: memref<1x128xf32, #tpu.memory_space<vmem>>, %arg16: memref<1x128xf32, #tpu.memory_space<vmem>>, %arg17: memref<1x16x128xf32, #tpu.memory_space<vmem>>, %arg18: memref<16x128xf32, #tpu.memory_space<vmem>>) attributes {dimension_semantics = [#tpu.dimension_semantics<parallel>, #tpu.dimension_semantics<arbitrary>], iteration_bounds = array<i64: 2, 2>, scalar_prefetch = 0 : i64, scratch_operands = 1 : i64, tpu.core_type = #tpu.core_type<tc>, window_params = [{transform_indices = @transform_0, window_bounds = array<i64: 1, 16, 128>}, {transform_indices = @transform_1, window_bounds = array<i64: 1, 1, 128>}, {transform_indices = @transform_2, window_bounds = array<i64: 1, 1, 128>}, {transform_indices = @transform_3, window_bounds = array<i64: 1, 128, 384>}, {transform_indices = @transform_4, window_bounds = array<i64: 1, 1, 384>}, {transform_indices = @transform_5, window_bounds = array<i64: 1, 128, 128>}, {transform_indices = @transform_6, window_bounds = array<i64: 1, 1, 128>}, {transform_indices = @transform_7, window_bounds = array<i64: 1, 1, 128>}, {transform_indices = @transform_8, window_bounds = array<i64: 1, 1, 128>}, {transform_indices = @transform_9, window_bounds = array<i64: 1, 128, 512>}, {transform_indices = @transform_10, window_bounds = array<i64: 1, 1, 512>}, {transform_indices = @transform_11, window_bounds = array<i64: 1, 512, 128>}, {transform_indices = @transform_12, window_bounds = array<i64: 1, 1, 128>}, {pipeline_mode = #tpu.pipeline_mode<synchronous>, transform_indices = @transform_13, window_bounds = array<i64: 1, 128>}, {pipeline_mode = #tpu.pipeline_mode<synchronous>, transform_indices = @transform_14, window_bounds = array<i64: 1, 128>}, {transform_indices = @transform_15, window_bounds = array<i64: 1, 16, 128>}]} {
    %c0_i32 = arith.constant 0 : i32
    %0 = arith.cmpi eq, %arg1, %c0_i32 : i32
    %1 = arith.extui %0 : i1 to i32
    %c0_i32_0 = arith.constant 0 : i32
    %2 = arith.cmpi ne, %1, %c0_i32_0 : i32
    scf.if %2 {
      %c0_81 = arith.constant 0 : index
      %c0_82 = arith.constant 0 : index
      %c0_83 = arith.constant 0 : index
      %184 = vector.load %arg2[%c0_81, %c0_82, %c0_83] : memref<1x16x128xf32, #tpu.memory_space<vmem>>, vector<1x16x128xf32>
      %185 = vector.shape_cast %184 : vector<1x16x128xf32> to vector<16x128xf32>
      %c0_84 = arith.constant 0 : index
      %c0_85 = arith.constant 0 : index
      %186 = vector.load %arg18[%c0_84, %c0_85] : memref<16x128xf32, #tpu.memory_space<vmem>>, vector<16x128xf32>
      tpu.vector_store %arg18[%c0_84, %c0_85], %185 {strides = array<i32>} : memref<16x128xf32, #tpu.memory_space<vmem>>, vector<16x128xf32>,
    } else {
    }
    %c0 = arith.constant 0 : index
    %c0_1 = arith.constant 0 : index
    %3 = vector.load %arg18[%c0, %c0_1] : memref<16x128xf32, #tpu.memory_space<vmem>>, vector<16x128xf32>
    %c0_2 = arith.constant 0 : index
    %c0_3 = arith.constant 0 : index
    %c0_4 = arith.constant 0 : index
    %4 = vector.load %arg3[%c0_2, %c0_3, %c0_4] : memref<1x1x128xf32, #tpu.memory_space<vmem>>, vector<1x1x128xf32>
    %5 = vector.shape_cast %4 : vector<1x1x128xf32> to vector<1x128xf32>
    %c0_5 = arith.constant 0 : index
    %c0_6 = arith.constant 0 : index
    %c0_7 = arith.constant 0 : index
    %6 = vector.load %arg4[%c0_5, %c0_6, %c0_7] : memref<1x1x128xf32, #tpu.memory_space<vmem>>, vector<1x1x128xf32>
    %7 = vector.shape_cast %6 : vector<1x1x128xf32> to vector<1x128xf32>
    %cst = arith.constant dense<0.000000e+00> : vector<16xf32>
    %8 = vector.multi_reduction <add>, %3, %cst [1] : vector<16x128xf32> to vector<16xf32>
    %9 = vector.shape_cast %8 : vector<16xf32> to vector<16x1xf32>
    %cst_8 = arith.constant 1.280000e+02 : f32
    %10 = vector.broadcast %cst_8 : f32 to vector<16x1xf32>
    %11 = arith.divf %9, %10 : vector<16x1xf32>
    %12 = vector.broadcast %11 : vector<16x1xf32> to vector<16x128xf32>
    %13 = arith.subf %3, %12 : vector<16x128xf32>
    %14 = arith.mulf %13, %13 : vector<16x128xf32>
    %cst_9 = arith.constant dense<0.000000e+00> : vector<16xf32>
    %15 = vector.multi_reduction <add>, %14, %cst_9 [1] : vector<16x128xf32> to vector<16xf32>
    %16 = vector.shape_cast %15 : vector<16xf32> to vector<16x1xf32>
    %cst_10 = arith.constant 1.280000e+02 : f32
    %17 = vector.broadcast %cst_10 : f32 to vector<16x1xf32>
    %18 = arith.divf %16, %17 : vector<16x1xf32>
    %cst_11 = arith.constant 9.99999974E-6 : f32
    %19 = vector.broadcast %cst_11 : f32 to vector<16x1xf32>
    %20 = arith.addf %18, %19 : vector<16x1xf32>
    %21 = math.rsqrt %20 : vector<16x1xf32>
    %22 = vector.broadcast %21 : vector<16x1xf32> to vector<16x128xf32>
    %23 = arith.mulf %13, %22 : vector<16x128xf32>
    %24 = vector.broadcast %5 : vector<1x128xf32> to vector<16x128xf32>
    %25 = arith.mulf %23, %24 : vector<16x128xf32>
    %26 = vector.broadcast %7 : vector<1x128xf32> to vector<16x128xf32>
    %27 = arith.addf %25, %26 : vector<16x128xf32>
    %28 = arith.truncf %27 : vector<16x128xf32> to vector<16x128xbf16>
    %c0_12 = arith.constant 0 : index
    %c0_13 = arith.constant 0 : index
    %c0_14 = arith.constant 0 : index
    %29 = vector.load %arg5[%c0_12, %c0_13, %c0_14] : memref<1x128x384xbf16, #tpu.memory_space<vmem>>, vector<1x128x384xbf16>
    %30 = vector.shape_cast %29 : vector<1x128x384xbf16> to vector<128x384xbf16>
    %cst_15 = arith.constant dense<0.000000e+00> : vector<16x384xf32>
    %31 = tpu.matmul %28, %30, %cst_15 {dimension_numbers = #tpu.dot_dimension_numbers<[1], [0], [0], [1], [0, 0, 1, 1], [], []>} : vector<16x128xbf16>, vector<128x384xbf16>, vector<16x384xf32> -> vector<16x384xf32>
    %c0_16 = arith.constant 0 : index
    %c0_17 = arith.constant 0 : index
    %c0_18 = arith.constant 0 : index
    %32 = vector.load %arg6[%c0_16, %c0_17, %c0_18] : memref<1x1x384xf32, #tpu.memory_space<vmem>>, vector<1x1x384xf32>
    %33 = vector.shape_cast %32 : vector<1x1x384xf32> to vector<1x384xf32>
    %34 = vector.broadcast %33 : vector<1x384xf32> to vector<16x384xf32>
    %35 = arith.addf %31, %34 : vector<16x384xf32>
    %36 = vector.extract_strided_slice %35 {offsets = [0, 0], sizes = [16, 128], strides = [1, 1]} : vector<16x384xf32> to vector<16x128xf32>
    %cst_19 = arith.constant 1.250000e-01 : f32
    %37 = vector.broadcast %cst_19 : f32 to vector<16x128xf32>
    %38 = arith.mulf %36, %37 : vector<16x128xf32>
    %39 = vector.shape_cast %38 : vector<16x128xf32> to vector<16x2x64xf32>
    %40 = tpu.transpose %39, [1, 0, 2] : vector<16x2x64xf32> -> vector<2x16x64xf32>
    %41 = arith.truncf %40 : vector<2x16x64xf32> to vector<2x16x64xbf16>
    %42 = vector.extract_strided_slice %35 {offsets = [0, 128], sizes = [16, 128], strides = [1, 1]} : vector<16x384xf32> to vector<16x128xf32>
    %43 = vector.shape_cast %42 : vector<16x128xf32> to vector<16x2x64xf32>
    %44 = tpu.transpose %43, [1, 0, 2] : vector<16x2x64xf32> -> vector<2x16x64xf32>
    %45 = arith.truncf %44 : vector<2x16x64xf32> to vector<2x16x64xbf16>
    %46 = vector.extract_strided_slice %35 {offsets = [0, 256], sizes = [16, 128], strides = [1, 1]} : vector<16x384xf32> to vector<16x128xf32>
    %47 = vector.shape_cast %46 : vector<16x128xf32> to vector<16x2x64xf32>
    %48 = tpu.transpose %47, [1, 0, 2] : vector<16x2x64xf32> -> vector<2x16x64xf32>
    %49 = arith.truncf %48 : vector<2x16x64xf32> to vector<2x16x64xbf16>
    %cst_20 = arith.constant -1.000000e+30 : f32
    %50 = vector.broadcast %cst_20 : f32 to vector<2x16x1xf32>
    %cst_21 = arith.constant 0.000000e+00 : f32
    %51 = vector.broadcast %cst_21 : f32 to vector<2x16x1xf32>
    %cst_22 = arith.constant 0.000000e+00 : f32
    %52 = vector.broadcast %cst_22 : f32 to vector<2x16x64xf32>
    "tpu.trace_start"() <{level = 10 : i32, message = "bqd,bkd->bqk"}> : () -> ()
    %cst_23 = arith.constant dense<0.000000e+00> : vector<2x16x16xf32>
    %53 = tpu.matmul %41, %45, %cst_23 {dimension_numbers = #tpu.dot_dimension_numbers<[2], [2], [1], [1], [0, 0, 0, 1, 1, 1], [0], [0]>} : vector<2x16x64xbf16>, vector<2x16x64xbf16>, vector<2x16x16xf32> -> vector<2x16x16xf32>
    "tpu.trace_stop"() : () -> ()
    %54 = tpu.iota {dimensions = array<i32: 0>} : vector<16x16xi32>
    %c0_i32_24 = arith.constant 0 : i32
    %55 = vector.broadcast %c0_i32_24 : i32 to vector<16x16xi32>
    %56 = arith.addi %54, %55 : vector<16x16xi32>
    %57 = tpu.iota {dimensions = array<i32: 1>} : vector<16x16xi32>
    %c0_i32_25 = arith.constant 0 : i32
    %58 = vector.broadcast %c0_i32_25 : i32 to vector<16x16xi32>
    %59 = arith.addi %57, %58 : vector<16x16xi32>
    %60 = arith.cmpi sge, %56, %59 : vector<16x16xi32>
    %61 = vector.shape_cast %60 : vector<16x16xi1> to vector<1x16x16xi1>
    %cst_26 = arith.constant -1.000000e+30 : f32
    %62 = vector.shape_cast %61 : vector<1x16x16xi1> to vector<1x16x16xi1>
    %63 = vector.broadcast %62 : vector<1x16x16xi1> to vector<2x16x16xi1>
    %64 = vector.broadcast %cst_26 : f32 to vector<2x16x16xf32>
    %65 = arith.select %63, %53, %64 : vector<2x16x16xi1>, vector<2x16x16xf32>
    %cst_27 = arith.constant dense<0xFF800000> : vector<2x16xf32>
    %66 = vector.multi_reduction <maximumf>, %65, %cst_27 [2] : vector<2x16x16xf32> to vector<2x16xf32>
    %67 = vector.shape_cast %66 : vector<2x16xf32> to vector<2x16x1xf32>
    %68 = arith.maximumf %50, %67 : vector<2x16x1xf32>
    %69 = arith.subf %50, %68 : vector<2x16x1xf32>
    %70 = math.exp %69 : vector<2x16x1xf32>
    %71 = vector.broadcast %68 : vector<2x16x1xf32> to vector<2x16x16xf32>
    %72 = arith.subf %65, %71 : vector<2x16x16xf32>
    %73 = math.exp %72 : vector<2x16x16xf32>
    %74 = arith.mulf %70, %51 : vector<2x16x1xf32>
    %cst_28 = arith.constant dense<0.000000e+00> : vector<2x16xf32>
    %75 = vector.multi_reduction <add>, %73, %cst_28 [2] : vector<2x16x16xf32> to vector<2x16xf32>
    %76 = vector.shape_cast %75 : vector<2x16xf32> to vector<2x16x1xf32>
    %77 = arith.addf %74, %76 : vector<2x16x1xf32>
    %78 = vector.broadcast %70 : vector<2x16x1xf32> to vector<2x16x64xf32>
    %79 = arith.mulf %78, %52 : vector<2x16x64xf32>
    %80 = arith.truncf %73 : vector<2x16x16xf32> to vector<2x16x16xbf16>
    "tpu.trace_start"() <{level = 10 : i32, message = "bqk,bkd->bqd"}> : () -> ()
    %cst_29 = arith.constant dense<0.000000e+00> : vector<2x16x64xf32>
    %81 = tpu.matmul %80, %49, %cst_29 {dimension_numbers = #tpu.dot_dimension_numbers<[2], [1], [1], [2], [0, 0, 0, 1, 1, 2], [0], [0]>} : vector<2x16x16xbf16>, vector<2x16x64xbf16>, vector<2x16x64xf32> -> vector<2x16x64xf32>
    "tpu.trace_stop"() : () -> ()
    %82 = arith.addf %79, %81 : vector<2x16x64xf32>
    %83 = tpu.reciprocal %77 {approx = true} : vector<2x16x1xf32> -> vector<2x16x1xf32>
    %84 = vector.broadcast %83 : vector<2x16x1xf32> to vector<2x16x64xf32>
    %85 = arith.mulf %82, %84 : vector<2x16x64xf32>
    %86 = tpu.transpose %85, [1, 0, 2] : vector<2x16x64xf32> -> vector<16x2x64xf32>
    %87 = vector.shape_cast %86 : vector<16x2x64xf32> to vector<16x128xf32>
    %88 = arith.truncf %87 : vector<16x128xf32> to vector<16x128xbf16>
    %c0_30 = arith.constant 0 : index
    %c0_31 = arith.constant 0 : index
    %c0_32 = arith.constant 0 : index
    %89 = vector.load %arg7[%c0_30, %c0_31, %c0_32] : memref<1x128x128xbf16, #tpu.memory_space<vmem>>, vector<1x128x128xbf16>
    %90 = vector.shape_cast %89 : vector<1x128x128xbf16> to vector<128x128xbf16>
    %cst_33 = arith.constant dense<0.000000e+00> : vector<16x128xf32>
    %91 = tpu.matmul %88, %90, %cst_33 {dimension_numbers = #tpu.dot_dimension_numbers<[1], [0], [0], [1], [0, 0, 1, 1], [], []>} : vector<16x128xbf16>, vector<128x128xbf16>, vector<16x128xf32> -> vector<16x128xf32>
    %c0_34 = arith.constant 0 : index
    %c0_35 = arith.constant 0 : index
    %c0_36 = arith.constant 0 : index
    %92 = vector.load %arg8[%c0_34, %c0_35, %c0_36] : memref<1x1x128xf32, #tpu.memory_space<vmem>>, vector<1x1x128xf32>
    %93 = vector.shape_cast %92 : vector<1x1x128xf32> to vector<1x128xf32>
    %94 = vector.broadcast %93 : vector<1x128xf32> to vector<16x128xf32>
    %95 = arith.addf %91, %94 : vector<16x128xf32>
    %96 = arith.addf %3, %95 : vector<16x128xf32>
    %c0_37 = arith.constant 0 : index
    %c0_38 = arith.constant 0 : index
    %c0_39 = arith.constant 0 : index
    %97 = vector.load %arg9[%c0_37, %c0_38, %c0_39] : memref<1x1x128xf32, #tpu.memory_space<vmem>>, vector<1x1x128xf32>
    %98 = vector.shape_cast %97 : vector<1x1x128xf32> to vector<1x128xf32>
    %c0_40 = arith.constant 0 : index
    %c0_41 = arith.constant 0 : index
    %c0_42 = arith.constant 0 : index
    %99 = vector.load %arg10[%c0_40, %c0_41, %c0_42] : memref<1x1x128xf32, #tpu.memory_space<vmem>>, vector<1x1x128xf32>
    %100 = vector.shape_cast %99 : vector<1x1x128xf32> to vector<1x128xf32>
    %cst_43 = arith.constant dense<0.000000e+00> : vector<16xf32>
    %101 = vector.multi_reduction <add>, %96, %cst_43 [1] : vector<16x128xf32> to vector<16xf32>
    %102 = vector.shape_cast %101 : vector<16xf32> to vector<16x1xf32>
    %cst_44 = arith.constant 1.280000e+02 : f32
    %103 = vector.broadcast %cst_44 : f32 to vector<16x1xf32>
    %104 = arith.divf %102, %103 : vector<16x1xf32>
    %105 = vector.broadcast %104 : vector<16x1xf32> to vector<16x128xf32>
    %106 = arith.subf %96, %105 : vector<16x128xf32>
    %107 = arith.mulf %106, %106 : vector<16x128xf32>
    %cst_45 = arith.constant dense<0.000000e+00> : vector<16xf32>
    %108 = vector.multi_reduction <add>, %107, %cst_45 [1] : vector<16x128xf32> to vector<16xf32>
    %109 = vector.shape_cast %108 : vector<16xf32> to vector<16x1xf32>
    %cst_46 = arith.constant 1.280000e+02 : f32
    %110 = vector.broadcast %cst_46 : f32 to vector<16x1xf32>
    %111 = arith.divf %109, %110 : vector<16x1xf32>
    %cst_47 = arith.constant 9.99999974E-6 : f32
    %112 = vector.broadcast %cst_47 : f32 to vector<16x1xf32>
    %113 = arith.addf %111, %112 : vector<16x1xf32>
    %114 = math.rsqrt %113 : vector<16x1xf32>
    %115 = vector.broadcast %114 : vector<16x1xf32> to vector<16x128xf32>
    %116 = arith.mulf %106, %115 : vector<16x128xf32>
    %117 = vector.broadcast %98 : vector<1x128xf32> to vector<16x128xf32>
    %118 = arith.mulf %116, %117 : vector<16x128xf32>
    %119 = vector.broadcast %100 : vector<1x128xf32> to vector<16x128xf32>
    %120 = arith.addf %118, %119 : vector<16x128xf32>
    %121 = arith.truncf %120 : vector<16x128xf32> to vector<16x128xbf16>
    %cst_48 = arith.constant 0.000000e+00 : f32
    %122 = vector.broadcast %cst_48 : f32 to vector<16x128xf32>
    %c0_49 = arith.constant 0 : index
    %c0_50 = arith.constant 0 : index
    %c0_51 = arith.constant 0 : index
    %123 = vector.load %arg11[%c0_49, %c0_50, %c0_51] : memref<1x128x512xbf16, #tpu.memory_space<vmem>>, vector<1x128x512xbf16>
    %124 = vector.shape_cast %123 : vector<1x128x512xbf16> to vector<128x512xbf16>
    %cst_52 = arith.constant dense<0.000000e+00> : vector<16x512xf32>
    %125 = tpu.matmul %121, %124, %cst_52 {dimension_numbers = #tpu.dot_dimension_numbers<[1], [0], [0], [1], [0, 0, 1, 1], [], []>} : vector<16x128xbf16>, vector<128x512xbf16>, vector<16x512xf32> -> vector<16x512xf32>
    %c0_53 = arith.constant 0 : index
    %c0_54 = arith.constant 0 : index
    %c0_55 = arith.constant 0 : index
    %126 = vector.load %arg12[%c0_53, %c0_54, %c0_55] : memref<1x1x512xf32, #tpu.memory_space<vmem>>, vector<1x1x512xf32>
    %127 = vector.shape_cast %126 : vector<1x1x512xf32> to vector<1x512xf32>
    %128 = vector.broadcast %127 : vector<1x512xf32> to vector<16x512xf32>
    %129 = arith.addf %125, %128 : vector<16x512xf32>
    %cst_56 = arith.constant 5.000000e-01 : f32
    %130 = vector.broadcast %cst_56 : f32 to vector<16x512xf32>
    %131 = arith.mulf %130, %129 : vector<16x512xf32>
    %cst_57 = arith.constant 0.707106769 : f32
    %132 = vector.broadcast %cst_57 : f32 to vector<16x512xf32>
    %133 = arith.mulf %129, %132 : vector<16x512xf32>
    %134 = math.absf %133 : vector<16x512xf32>
    %cst_58 = arith.constant 0.327591091 : f32
    %135 = vector.broadcast %cst_58 : f32 to vector<16x512xf32>
    %136 = arith.mulf %135, %134 : vector<16x512xf32>
    %cst_59 = arith.constant 1.000000e+00 : f32
    %137 = vector.broadcast %cst_59 : f32 to vector<16x512xf32>
    %138 = arith.addf %137, %136 : vector<16x512xf32>
    %cst_60 = arith.constant 1.000000e+00 : f32
    %139 = vector.broadcast %cst_60 : f32 to vector<16x512xf32>
    %140 = arith.divf %139, %138 : vector<16x512xf32>
    %cst_61 = arith.constant 1.06140542 : f32
    %141 = vector.broadcast %cst_61 : f32 to vector<16x512xf32>
    %142 = arith.mulf %141, %140 : vector<16x512xf32>
    %cst_62 = arith.constant -1.45315206 : f32
    %143 = vector.broadcast %cst_62 : f32 to vector<16x512xf32>
    %144 = arith.addf %142, %143 : vector<16x512xf32>
    %145 = arith.mulf %144, %140 : vector<16x512xf32>
    %cst_63 = arith.constant 1.42141378 : f32
    %146 = vector.broadcast %cst_63 : f32 to vector<16x512xf32>
    %147 = arith.addf %145, %146 : vector<16x512xf32>
    %148 = arith.mulf %147, %140 : vector<16x512xf32>
    %cst_64 = arith.constant -0.284496725 : f32
    %149 = vector.broadcast %cst_64 : f32 to vector<16x512xf32>
    %150 = arith.addf %148, %149 : vector<16x512xf32>
    %151 = arith.mulf %150, %140 : vector<16x512xf32>
    %cst_65 = arith.constant 0.254829586 : f32
    %152 = vector.broadcast %cst_65 : f32 to vector<16x512xf32>
    %153 = arith.addf %151, %152 : vector<16x512xf32>
    %154 = arith.mulf %153, %140 : vector<16x512xf32>
    %cst_66 = arith.constant 0.000000e+00 : f32
    %155 = vector.broadcast %cst_66 : f32 to vector<16x512xf32>
    %156 = arith.subf %155, %134 : vector<16x512xf32>
    %157 = arith.mulf %156, %134 : vector<16x512xf32>
    %158 = math.exp %157 : vector<16x512xf32>
    %159 = arith.mulf %154, %158 : vector<16x512xf32>
    %cst_67 = arith.constant 1.000000e+00 : f32
    %160 = vector.broadcast %cst_67 : f32 to vector<16x512xf32>
    %161 = arith.subf %160, %159 : vector<16x512xf32>
    %cst_68 = arith.constant 0.000000e+00 : f32
    %162 = vector.broadcast %cst_68 : f32 to vector<16x512xf32>
    %163 = arith.cmpf oge, %133, %162 : vector<16x512xf32>
    %cst_69 = arith.constant 0.000000e+00 : f32
    %164 = vector.broadcast %cst_69 : f32 to vector<16x512xf32>
    %165 = arith.subf %164, %161 : vector<16x512xf32>
    %166 = arith.select %163, %161, %165 : vector<16x512xi1>, vector<16x512xf32>
    %cst_70 = arith.constant 1.000000e+00 : f32
    %167 = vector.broadcast %cst_70 : f32 to vector<16x512xf32>
    %168 = arith.addf %167, %166 : vector<16x512xf32>
    %169 = arith.mulf %131, %168 : vector<16x512xf32>
    %170 = arith.truncf %169 : vector<16x512xf32> to vector<16x512xbf16>
    %c0_71 = arith.constant 0 : index
    %c0_72 = arith.constant 0 : index
    %c0_73 = arith.constant 0 : index
    %171 = vector.load %arg13[%c0_71, %c0_72, %c0_73] : memref<1x512x128xbf16, #tpu.memory_space<vmem>>, vector<1x512x128xbf16>
    %172 = vector.shape_cast %171 : vector<1x512x128xbf16> to vector<512x128xbf16>
    %cst_74 = arith.constant dense<0.000000e+00> : vector<16x128xf32>
    %173 = tpu.matmul %170, %172, %cst_74 {dimension_numbers = #tpu.dot_dimension_numbers<[1], [0], [0], [1], [0, 0, 1, 1], [], []>} : vector<16x512xbf16>, vector<512x128xbf16>, vector<16x128xf32> -> vector<16x128xf32>
    %174 = arith.addf %122, %173 : vector<16x128xf32>
    %175 = arith.addf %96, %174 : vector<16x128xf32>
    %c0_75 = arith.constant 0 : index
    %c0_76 = arith.constant 0 : index
    %c0_77 = arith.constant 0 : index
    %176 = vector.load %arg14[%c0_75, %c0_76, %c0_77] : memref<1x1x128xf32, #tpu.memory_space<vmem>>, vector<1x1x128xf32>
    %177 = vector.shape_cast %176 : vector<1x1x128xf32> to vector<1x128xf32>
    %178 = vector.broadcast %177 : vector<1x128xf32> to vector<16x128xf32>
    %179 = arith.addf %175, %178 : vector<16x128xf32>
    %c0_78 = arith.constant 0 : index
    %c0_79 = arith.constant 0 : index
    %180 = vector.load %arg18[%c0_78, %c0_79] : memref<16x128xf32, #tpu.memory_space<vmem>>, vector<16x128xf32>
    tpu.vector_store %arg18[%c0_78, %c0_79], %179 {strides = array<i32>} : memref<16x128xf32, #tpu.memory_space<vmem>>, vector<16x128xf32>,
    %c1_i32 = arith.constant 1 : i32
    %181 = arith.cmpi eq, %arg1, %c1_i32 : i32
    %182 = arith.extui %181 : i1 to i32
    %c0_i32_80 = arith.constant 0 : i32
    %183 = arith.cmpi ne, %182, %c0_i32_80 : i32
    scf.if %183 {
      %c0_81 = arith.constant 0 : index
      %c0_82 = arith.constant 0 : index
      %184 = vector.load %arg15[%c0_81, %c0_82] : memref<1x128xf32, #tpu.memory_space<vmem>>, vector<1x128xf32>
      %c0_83 = arith.constant 0 : index
      %c0_84 = arith.constant 0 : index
      %185 = vector.load %arg16[%c0_83, %c0_84] : memref<1x128xf32, #tpu.memory_space<vmem>>, vector<1x128xf32>
      %cst_85 = arith.constant dense<0.000000e+00> : vector<16xf32>
      %186 = vector.multi_reduction <add>, %179, %cst_85 [1] : vector<16x128xf32> to vector<16xf32>
      %187 = vector.shape_cast %186 : vector<16xf32> to vector<16x1xf32>
      %cst_86 = arith.constant 1.280000e+02 : f32
      %188 = vector.broadcast %cst_86 : f32 to vector<16x1xf32>
      %189 = arith.divf %187, %188 : vector<16x1xf32>
      %190 = vector.broadcast %189 : vector<16x1xf32> to vector<16x128xf32>
      %191 = arith.subf %179, %190 : vector<16x128xf32>
      %192 = arith.mulf %191, %191 : vector<16x128xf32>
      %cst_87 = arith.constant dense<0.000000e+00> : vector<16xf32>
      %193 = vector.multi_reduction <add>, %192, %cst_87 [1] : vector<16x128xf32> to vector<16xf32>
      %194 = vector.shape_cast %193 : vector<16xf32> to vector<16x1xf32>
      %cst_88 = arith.constant 1.280000e+02 : f32
      %195 = vector.broadcast %cst_88 : f32 to vector<16x1xf32>
      %196 = arith.divf %194, %195 : vector<16x1xf32>
      %cst_89 = arith.constant 9.99999974E-6 : f32
      %197 = vector.broadcast %cst_89 : f32 to vector<16x1xf32>
      %198 = arith.addf %196, %197 : vector<16x1xf32>
      %199 = math.rsqrt %198 : vector<16x1xf32>
      %200 = vector.broadcast %199 : vector<16x1xf32> to vector<16x128xf32>
      %201 = arith.mulf %191, %200 : vector<16x128xf32>
      %202 = vector.broadcast %184 : vector<1x128xf32> to vector<16x128xf32>
      %203 = arith.mulf %201, %202 : vector<16x128xf32>
      %204 = vector.broadcast %185 : vector<1x128xf32> to vector<16x128xf32>
      %205 = arith.addf %203, %204 : vector<16x128xf32>
      %206 = vector.shape_cast %205 : vector<16x128xf32> to vector<1x16x128xf32>
      %c0_90 = arith.constant 0 : index
      %c0_91 = arith.constant 0 : index
      %c0_92 = arith.constant 0 : index
      %207 = vector.load %arg17[%c0_90, %c0_91, %c0_92] : memref<1x16x128xf32, #tpu.memory_space<vmem>>, vector<1x16x128xf32>
      tpu.vector_store %arg17[%c0_90, %c0_91, %c0_92], %206 {strides = array<i32>} : memref<1x16x128xf32, #tpu.memory_space<vmem>>, vector<1x16x128xf32>,
    } else {
    }
    return
  }
  func.func @transform_0(%arg0: i32, %arg1: i32) -> (i32, i32, i32) {
    %c0_i32 = arith.constant 0 : i32
    %c0_i32_0 = arith.constant 0 : i32
    %c0_i32_1 = arith.constant 0 : i32
    return %arg0, %c0_i32, %c0_i32_0 : i32, i32, i32
  }
  func.func @transform_1(%arg0: i32, %arg1: i32) -> (i32, i32, i32) {
    %c0_i32 = arith.constant 0 : i32
    %c0_i32_0 = arith.constant 0 : i32
    %c0_i32_1 = arith.constant 0 : i32
    return %arg1, %c0_i32, %c0_i32_0 : i32, i32, i32
  }
  func.func @transform_2(%arg0: i32, %arg1: i32) -> (i32, i32, i32) {
    %c0_i32 = arith.constant 0 : i32
    %c0_i32_0 = arith.constant 0 : i32
    %c0_i32_1 = arith.constant 0 : i32
    return %arg1, %c0_i32, %c0_i32_0 : i32, i32, i32
  }
  func.func @transform_3(%arg0: i32, %arg1: i32) -> (i32, i32, i32) {
    %c0_i32 = arith.constant 0 : i32
    %c0_i32_0 = arith.constant 0 : i32
    %c0_i32_1 = arith.constant 0 : i32
    return %arg1, %c0_i32, %c0_i32_0 : i32, i32, i32
  }
  func.func @transform_4(%arg0: i32, %arg1: i32) -> (i32, i32, i32) {
    %c0_i32 = arith.constant 0 : i32
    %c0_i32_0 = arith.constant 0 : i32
    %c0_i32_1 = arith.constant 0 : i32
    return %arg1, %c0_i32, %c0_i32_0 : i32, i32, i32
  }
  func.func @transform_5(%arg0: i32, %arg1: i32) -> (i32, i32, i32) {
    %c0_i32 = arith.constant 0 : i32
    %c0_i32_0 = arith.constant 0 : i32
    %c0_i32_1 = arith.constant 0 : i32
    return %arg1, %c0_i32, %c0_i32_0 : i32, i32, i32
  }
  func.func @transform_6(%arg0: i32, %arg1: i32) -> (i32, i32, i32) {
    %c0_i32 = arith.constant 0 : i32
    %c0_i32_0 = arith.constant 0 : i32
    %c0_i32_1 = arith.constant 0 : i32
    return %arg1, %c0_i32, %c0_i32_0 : i32, i32, i32
  }
  func.func @transform_7(%arg0: i32, %arg1: i32) -> (i32, i32, i32) {
    %c0_i32 = arith.constant 0 : i32
    %c0_i32_0 = arith.constant 0 : i32
    %c0_i32_1 = arith.constant 0 : i32
    return %arg1, %c0_i32, %c0_i32_0 : i32, i32, i32
  }
  func.func @transform_8(%arg0: i32, %arg1: i32) -> (i32, i32, i32) {
    %c0_i32 = arith.constant 0 : i32
    %c0_i32_0 = arith.constant 0 : i32
    %c0_i32_1 = arith.constant 0 : i32
    return %arg1, %c0_i32, %c0_i32_0 : i32, i32, i32
  }
  func.func @transform_9(%arg0: i32, %arg1: i32) -> (i32, i32, i32) {
    %c0_i32 = arith.constant 0 : i32
    %c0_i32_0 = arith.constant 0 : i32
    %c0_i32_1 = arith.constant 0 : i32
    return %arg1, %c0_i32, %c0_i32_0 : i32, i32, i32
  }
  func.func @transform_10(%arg0: i32, %arg1: i32) -> (i32, i32, i32) {
    %c0_i32 = arith.constant 0 : i32
    %c0_i32_0 = arith.constant 0 : i32
    %c0_i32_1 = arith.constant 0 : i32
    return %arg1, %c0_i32, %c0_i32_0 : i32, i32, i32
  }
  func.func @transform_11(%arg0: i32, %arg1: i32) -> (i32, i32, i32) {
    %c0_i32 = arith.constant 0 : i32
    %c0_i32_0 = arith.constant 0 : i32
    %c0_i32_1 = arith.constant 0 : i32
    return %arg1, %c0_i32, %c0_i32_0 : i32, i32, i32
  }
  func.func @transform_12(%arg0: i32, %arg1: i32) -> (i32, i32, i32) {
    %c0_i32 = arith.constant 0 : i32
    %c0_i32_0 = arith.constant 0 : i32
    %c0_i32_1 = arith.constant 0 : i32
    return %arg1, %c0_i32, %c0_i32_0 : i32, i32, i32
  }
  func.func @transform_13(%arg0: i32, %arg1: i32) -> (i32, i32) {
    %c0_i32 = arith.constant 0 : i32
    %c0_i32_0 = arith.constant 0 : i32
    %c0_i32_1 = arith.constant 0 : i32
    return %c0_i32, %c0_i32_0 : i32, i32
  }
  func.func @transform_14(%arg0: i32, %arg1: i32) -> (i32, i32) {
    %c0_i32 = arith.constant 0 : i32
    %c0_i32_0 = arith.constant 0 : i32
    %c0_i32_1 = arith.constant 0 : i32
    return %c0_i32, %c0_i32_0 : i32, i32
  }
  func.func @transform_15(%arg0: i32, %arg1: i32) -> (i32, i32, i32) {
    %c0_i32 = arith.constant 0 : i32
    %c0_i32_0 = arith.constant 0 : i32
    %c0_i32_1 = arith.constant 0 : i32
    return %arg0, %c0_i32, %c0_i32_0 : i32, i32, i32
  }
}

</mosaic_0001>

<bundles_post_ra>
// kernel: tpu_custom_call.1
= control target key start
LH: loop header
LB: loop body
LE: loop exit
PB: predicated region body
PF: predicated region fallthrough
CT: control target
= control target key end

     0   :  { %s5928_s0 = inlined_call_operand.hbm [shape: f32[2,16,128], index: 0, kind: input, shape index: {}]   ;;  %s5929_s1 = inlined_call_operand.hbm [shape: f32[2,1,128], index: 1, kind: input, shape index: {}]   ;;  %s5930_s2 = inlined_call_operand.hbm [shape: f32[2,1,128], index: 2, kind: input, shape index: {}]   ;;  %s5931_s3 = inlined_call_operand.hbm [shape: bf16[2,128,384], index: 3, kind: input, shape index: {}]   ;;  %s5932_s4 = inlined_call_operand.vmem [shape: f32[2,1,384], index: 4, kind: input, shape index: {}]   ;;  %s5933_s5 = inlined_call_operand.hbm [shape: bf16[2,128,128], index: 5, kind: input, shape index: {}]   ;;  %s5934_s6 = inlined_call_operand.vmem [shape: f32[2,1,128], index: 6, kind: input, shape index: {}]   ;;  %s5935_s7 = inlined_call_operand.vmem [shape: f32[2,1,128], index: 7, kind: input, shape index: {}]   ;;  %s5936_s8 = inlined_call_operand.vmem [shape: f32[2,1,128], index: 8, kind: input, shape index: {}]   ;;  %s5937_s9 = inlined_call_operand.hbm [shape: bf16[2,128,512], index: 9, kind: input, shape index: {}]   ;;  %s5938_s10 = inlined_call_operand.vmem [shape: f32[2,1,512], index: 10, kind: input, shape index: {}]   ;;  %s5939_s11 = inlined_call_operand.hbm [shape: bf16[2,512,128], index: 11, kind: input, shape index: {}]   ;;  %s5940_s12 = inlined_call_operand.vmem [shape: f32[2,1,128], index: 12, kind: input, shape index: {}]   ;;  %s5941_s13 = inlined_call_operand.vmem [shape: f32[1,128], index: 13, kind: input, shape index: {}]   ;;  %s5942_s14 = inlined_call_operand.vmem [shape: f32[1,128], index: 14, kind: input, shape index: {}]   ;;  %s5943_s15 = inlined_call_operand.hbm [shape: f32[2,16,128], index: 15, kind: output, shape index: {}]  }
   0x1   :  { %5977 = sst [smem:[#allocation39_spill]] %s5928_s0 }
   0x2   :  { %5978 = sst [smem:[#allocation40_spill]] %s5929_s1 }
   0x3   :  { %5979 = sst [smem:[#allocation41_spill]] %s5930_s2 }
   0x4   :  { %5980 = sst [smem:[#allocation42_spill]] %s5931_s3 }
   0x5   :  { %5981 = sst [smem:[#allocation43_spill]] %s5932_s4 }
   0x6   :  { %5982 = sst [smem:[#allocation44_spill]] %s5933_s5 }
   0x7   :  { %5983 = sst [smem:[#allocation45_spill]] %s5934_s6 }
   0x8   :  { %5984 = sst [smem:[#allocation46_spill]] %s5935_s7 }
   0x9   :  { %5985 = sst [smem:[#allocation47_spill]] %s5936_s8 }
   0xa   :  { %5986 = sst [smem:[#allocation48_spill]] %s5937_s9 }
   0xb   :  { %5987 = sst [smem:[#allocation49_spill]] %s5938_s10 }
   0xc   :  { %5988 = sst [smem:[#allocation50_spill]] %s5939_s11 }
   0xd   :  { %5989 = sst [smem:[#allocation51_spill]] %s5940_s12 }
   0xe   :  { %5990 = sst [smem:[#allocation52_spill]] %s5941_s13 }
   0xf   :  { %5991 = sst [smem:[#allocation53_spill]] %s5942_s14 }
  0x10   :  { %5992 = sst [smem:[#allocation54_spill]] %s5943_s15 }
  0x11   :  { %20 = vsyncpa [#allocation4], 0 }
  0x12   :  { %22 = vsyncpa [#allocation4 + $0x1], 0 }
  0x13   :  { %23 = vsyncpa [#allocation7], 0 }
  0x14   :  { %25 = vsyncpa [#allocation7 + $0x1], 0 }
  0x15   :  { %26 = vsyncpa [#allocation10], 0 }
  0x16   :  { %28 = vsyncpa [#allocation10 + $0x1], 0 }
  0x17   :  { %29 = vsyncpa [#allocation13], 0 }
  0x18   :  { %31 = vsyncpa [#allocation13 + $0x1], 0 }
  0x19   :  { %32 = vsyncpa [#allocation5], 0 }
  0x1a   :  { %34 = vsyncpa [#allocation5 + $0x1], 0  ;;  %s4838_s18 = smov 0   ;;  %s4840_s19 = smov 0  }
  0x1b   :  { %s4842_s20 = smov 0   ;;  %s4844_s21 = smov 0  }
  0x1c   :  { %s4846_s22 = smov 0   ;;  %s4848_s23 = smov 0  }
  0x1d   :  { %s4850_s24 = smov 0   ;;  %s4852_s25 = smov 0  }
  0x1e   :  { %s4854_s26 = smov 0   ;;  %s4856_s27 = smov 0  }
  0x1f   :  { %s4858_s28 = smov 0  }
  0x20 LB: > { %5993 = sst [smem:[#allocation21_spill]] %s4696_s19  ;;  %s4892_s29 = sadd.s32 4294967295, %s4732_s28   ;;  %s4732_s28 = sphi %s4858_s28, %s40_s28   ;;  %s4728_s27 = sphi %s4856_s27, %s6079_s27   ;;  %s4724_s26 = sphi %s4854_s26, %s6078_s26   ;;  %s4720_s25 = sphi %s4852_s25, %s6077_s25   ;;  %s4716_s24 = sphi %s4850_s24, %s6076_s24   ;;  %s4712_s23 = sphi %s4848_s23, %s6075_s23   ;;  %s4708_s22 = sphi %s4846_s22, %s6074_s22   ;;  %s4704_s21 = sphi %s4844_s21, %s6073_s21   ;;  %s4700_s20 = sphi %s4842_s20, %s6072_s20   ;;  %s4696_s19 = sphi %s4840_s19, %s6071_s19   ;;  %s4692_s18 = sphi %s4838_s18, %s6070_s18  }
  0x21   : > { %5994 = sst [smem:[#allocation22_spill]] %s4700_s20  ;;  %s49_s30 = sadd.s32 1, %s4724_s26 }
  0x22   : > { %5995 = sst [smem:[#allocation23_spill]] %s4704_s21  ;;  %p4895_p0 = scmp.ge.s32.totalorder %s49_s30, 2 }
  0x23   : > { %5996 = sst [smem:[#allocation24_spill]] %s4708_s22  ;;  %p5950_p1 = scmp.eq.s32.totalorder %s4732_s28, 0 }
  0x24   : > { %5997 = sst [smem:[#allocation25_spill]] %s4712_s23  ;;  %p5949_p2 = scmp.eq.s32.totalorder %s4892_s29, 0 }
  0x25   : > { %5998 = sst [smem:[#allocation26_spill]] %s4716_s24  ;;  %s85_s17 = sadd.s32 1, %s4700_s20 }
  0x26   : > { %5999 = sst [smem:[#allocation27_spill]] %s4720_s25  ;;  %s6081_s30 = smov (%p4895_p0, %s49_s30), 0 }
  0x27   : > { %6000 = sst [smem:[#allocation28_spill]] %s4724_s26  ;;  %p92_p3 = scmp.ne.s32.totalorder %s4700_s20, %s4696_s19 }
  0x28   : > { %6001 = sst [smem:[#allocation29_spill]] %s4728_s27  ;;  %p98_p4 = scmp.ne.s32.totalorder %s4696_s19, %s4692_s18 }
  0x29   : > { %6002 = sst [smem:[#allocation30_spill]] %s4732_s28  ;;  %s82_s15 = ssub.s32 %s4724_s26, %s6081_s30 }
  0x2a   : > { %s6003_s16 = scalar_select %p4895_p0, 1, 0 }
  0x2b   : > { %6004 = sst [smem:[#allocation31_spill]] %s6081_s30  ;;  %p83_p5 = scmp.eq.s32.totalorder %s82_s15, 0 }
  0x2c   : > { %p94_p6 = por %p92_p3, %p5950_p1  ;;  %p4915_p7 = por %p98_p4, %p5949_p2 }
  0x2d   : > { %p5948_p8 = scmp.lt.s32.totalorder %s4732_s28, 4  ;;  %s4924_s13 = sand.u32 1, %s4732_s28  }
  0x2e   : > { %s6005_s25 = scalar_select %p4915_p7, 1, 0 }
  0x2f   : > { %s4921_s14 = scalar_select %p83_p5, %s4700_s20, %s85_s17  }
  0x30   : > { %6006 = sst [smem:[#allocation32_spill]] %s6005_s25  ;;  %s4927_s12 = sand.u32 1, %s4700_s20  }
  0x31   : > { %6007 = sst [smem:[#allocation33_spill]] %s4921_s14  ;;  %s3752_s18 = sshll.u32 %s4724_s26, 4 }
  0x32   : > { %s506_s10 = scalar_lea.vmem [#allocation6], %s4927_s12  ;;  %s6008_s1 = sld [smem:[#allocation40_spill]] }
  0x33   : > { %s513_s30 = sshll.u32 %s506_s10, 4  ;;  %p4940_p9 = pnand %p5948_p8, %p94_p6  ;;  %s4936_s30 = int_to_ptr.vmem [resolvable:$true] %s513_s30 }
  0x34   : > { %s6010_s2 = sld [smem:[#allocation41_spill]] }
  0x35   : > { %s6009_s17 = scalar_select %p4940_p9, 1, 0 }
  0x36   : > { %p4955_p12 = pneg %p4940_p9 }
  0x38   : > { %s4934_s8 = scalar_lea.hbm %s6008_s1, %s3752_s18  ;;  %s4393_s14 = scalar_lea.hbm %s6008_s1, 32 }
  0x39   : > { %s4388_s15 = scalar_lea.hbm %s4934_s8, 16  ;;  %p4394_p4 = scmp.lt.u32.totalorder %s4934_s8, %s6008_s1 }
  0x3a   : > { %s4947_s10 = scalar_lea.hbm %s6010_s2, %s3752_s18  ;;  %p4389_p11 = scmp.ne.s32.totalorder %s4934_s8, %s4388_s15 }
  0x3b   : > { %p4395_p5 = scmp.lt.u32.totalorder %s4393_s14, %s4388_s15  ;;  %p4397_p8 = scmp.lt.u32.totalorder %s4388_s15, %s4934_s8 }
  0x3c   : > { %p4391_p13 = pnand %p4955_p12, %p4389_p11 }
  0x3d   : > { %p4396_p6 = por %p4395_p5, %p4394_p4 }
  0x3e   : > { %p4392_p3 = pneg %p4391_p13 }
  0x3f   : > { %p4398_p2 = por %p4397_p8, %p4396_p6 }
  0x41   : > { %p4399_p1 = pnand %p4398_p2, %p4392_p3 }
  0x43   : > { %4402 = shalt.err (!%p4399_p1)
}
  0x44   : > { %s4403_s4 = scalar_lea.vmem %s4936_s30, 16  ;;  %s4734_s6 = smov [#allocation6]  }
  0x45   : > { %p4404_p11 = scmp.ne.s32.totalorder %s4936_s30, %s4403_s4  ;;  %s4408_s24 = sshll.u32 %s4734_s6, 4  ;;  %s4409_s24 = int_to_ptr.vmem [resolvable:$false] %s4408_s24 }
  0x46   : > { %s4410_s20 = scalar_lea.vmem %s4409_s24, 32  ;;  %p4411_p7 = scmp.lt.s32.totalorder %s4936_s30, %s4409_s24 }
  0x47   : > { %p4406_p13 = pnand %p4404_p11, %p4955_p12  ;;  %p4412_p0 = scmp.lt.s32.totalorder %s4410_s20, %s4403_s4 }
  0x49   : > { %p4407_p10 = pneg %p4406_p13  ;;  %p4413_p4 = por %p4412_p0, %p4411_p7 }
  0x4b   : > { %p4414_p5 = pnand %p4413_p4, %p4407_p10 }
  0x4d   : > { %4417 = shalt.err (!%p4414_p5)
}
  0x4e   : > { %s6012_s15 = scalar_lea.sflag [#allocation7], %s4924_s13  ;;  %p657_p1 = scmp.lt.s32.totalorder %s4732_s28, 5 }
  0x4f   : > { %4067 = dma.hbm_to_vmem [thread:$0]  (!%p4940_p9), %s4934_s8, 16, %s4936_s30, %s6012_s15  }
  0x50   : > { %s4041_s14 = smul.u32 192, %s4927_s12  ;;  %p6013_p2 = scmp.ge.s32.totalorder %s4732_s28, 1 }
  0x51   : > { %s4042_s18 = smul.u32 3072, %s4724_s26  ;;  %s6016_s3 = sld [smem:[#allocation42_spill]] }
  0x52   : > { %p4985_p0 = pnand %p6013_p2, %p657_p1  ;;  %s541_s1 = scalar_lea.vmem [#allocation9], %s4041_s14 }
  0x53   : > { %s548_s25 = sshll.u32 %s541_s1, 4  ;;  %s5958_s8 = scalar_lea.sflag [#allocation10], %s4924_s13  ;;  %s4994_s25 = int_to_ptr.vmem [resolvable:$true] %s548_s25 }
  0x54   : > { %s6014_s4 = scalar_select %p4985_p0, 1, 0 }
  0x56   : > { %6015 = sst [smem:[#allocation34_spill]] %s6014_s4 }
  0x57   : > { %s4992_s20 = scalar_lea.hbm %s6016_s3, %s4042_s18  ;;  %s4423_s6 = scalar_lea.hbm %s6016_s3, 6144 }
  0x58   : > { %s4418_s30 = scalar_lea.hbm %s4992_s20, 3072  ;;  %p4424_p3 = scmp.lt.u32.totalorder %s4992_s20, %s6016_s3 }
  0x59   : > { %p4419_p7 = scmp.ne.s32.totalorder %s4992_s20, %s4418_s30  ;;  %p4425_p6 = scmp.lt.u32.totalorder %s4423_s6, %s4418_s30 }
  0x5a   : > { %p4427_p13 = scmp.lt.u32.totalorder %s4418_s30, %s4992_s20 }
  0x5b   : > { %p4421_p8 = pnand %p4419_p7, %p4955_p12  ;;  %p4426_p11 = por %p4425_p6, %p4424_p3 }
  0x5d   : > { %p4422_p10 = pneg %p4421_p8  ;;  %p4428_p4 = por %p4427_p13, %p4426_p11 }
  0x5f   : > { %p4429_p5 = pnand %p4428_p4, %p4422_p10 }
  0x61   : > { %4432 = shalt.err (!%p4429_p5)
}
  0x62   : > { %s4433_s1 = scalar_lea.vmem %s4994_s25, 3072  ;;  %s4735_s19 = smov [#allocation9]  }
  0x63   : > { %p4434_p1 = scmp.ne.s32.totalorder %s4994_s25, %s4433_s1  ;;  %s4438_s14 = sshll.u32 %s4735_s19, 4  ;;  %s4439_s14 = int_to_ptr.vmem [resolvable:$false] %s4438_s14 }
  0x64   : > { %s4440_s15 = scalar_lea.vmem %s4439_s14, 6144  ;;  %p4441_p8 = scmp.lt.s32.totalorder %s4994_s25, %s4439_s14 }
  0x65   : > { %p4436_p2 = pnand %p4434_p1, %p4955_p12  ;;  %p4442_p0 = scmp.lt.s32.totalorder %s4440_s15, %s4433_s1 }
  0x67   : > { %p4437_p7 = pneg %p4436_p2  ;;  %p4443_p3 = por %p4442_p0, %p4441_p8 }
  0x69   : > { %p4444_p6 = pnand %p4443_p3, %p4437_p7 }
  0x6b   : > { %4447 = shalt.err (!%p4444_p6)
}
  0x6c   : > { %s4736_s30 = smov 192   ;;  %s4737_s6 = smov 12  }
  0x6d   : > { %4073 = dma.hbm_to_vmem [thread:$0]  (!%p4940_p9), %s4992_s20, 3072, %s4994_s25, %s5958_s8, %s4736_s30, %s4736_s30, %s4737_s6  }
  0x6e   : > { %s3758_s18 = sshll.u32 %s4927_s12, 8  ;;  %s3904_s24 = sshll.u32 %s4724_s26, 12 }
  0x6f   : > { %s6017_s9 = sld [smem:[#allocation48_spill]]  ;;  %s608_s15 = scalar_lea.vmem [#allocation12], %s3758_s18 }
  0x70   : > { %s615_s3 = sshll.u32 %s608_s15, 4  ;;  %s5959_s4 = scalar_lea.sflag [#allocation13], %s4924_s13  ;;  %s5031_s3 = int_to_ptr.vmem [resolvable:$true] %s615_s3 }
  0x75   : > { %s5027_s14 = scalar_lea.hbm %s6017_s9, %s3904_s24  ;;  %s4453_s30 = scalar_lea.hbm %s6017_s9, 8192 }
  0x76   : > { %s4448_s5 = scalar_lea.hbm %s5027_s14, 4096  ;;  %p4454_p13 = scmp.lt.u32.totalorder %s5027_s14, %s6017_s9 }
  0x77   : > { %p4449_p0 = scmp.ne.s32.totalorder %s5027_s14, %s4448_s5  ;;  %p4455_p4 = scmp.lt.u32.totalorder %s4453_s30, %s4448_s5 }
  0x78   : > { %p4457_p1 = scmp.lt.u32.totalorder %s4448_s5, %s5027_s14 }
  0x79   : > { %p4451_p10 = pnand %p4449_p0, %p4955_p12  ;;  %p4456_p5 = por %p4455_p4, %p4454_p13 }
  0x7b   : > { %p4452_p11 = pneg %p4451_p10  ;;  %p4458_p2 = por %p4457_p1, %p4456_p5 }
  0x7d   : > { %p4459_p7 = pnand %p4458_p2, %p4452_p11 }
  0x7f   : > { %4462 = shalt.err (!%p4459_p7)
}
  0x80   : > { %s4463_s19 = scalar_lea.vmem %s5031_s3, 4096  ;;  %s4738_s15 = smov [#allocation12]  }
  0x81   : > { %p4464_p8 = scmp.ne.s32.totalorder %s5031_s3, %s4463_s19  ;;  %s4468_s25 = sshll.u32 %s4738_s15, 4  ;;  %s4469_s25 = int_to_ptr.vmem [resolvable:$false] %s4468_s25 }
  0x82   : > { %s4470_s20 = scalar_lea.vmem %s4469_s25, 8192  ;;  %p4471_p0 = scmp.lt.s32.totalorder %s5031_s3, %s4469_s25 }
  0x83   : > { %p4466_p3 = pnand %p4464_p8, %p4955_p12  ;;  %p4472_p10 = scmp.lt.s32.totalorder %s4470_s20, %s4463_s19 }
  0x85   : > { %p4467_p6 = pneg %p4466_p3  ;;  %p4473_p13 = por %p4472_p10, %p4471_p0 }
  0x87   : > { %p4474_p4 = pnand %p4473_p13, %p4467_p6 }
  0x89   : > { %4477 = shalt.err (!%p4474_p4)
}
  0x8a   : > { %s4739_s5 = smov 256   ;;  %s4740_s30 = smov 16  }
  0x8b   : > { %4079 = dma.hbm_to_vmem [thread:$0]  (!%p4940_p9), %s5027_s14, 4096, %s5031_s3, %s5959_s4, %s4739_s5, %s4739_s5, %s4740_s30  }
  0x8c   : > { %s6018_s11 = sld [smem:[#allocation50_spill]]  ;;  %s636_s15 = scalar_lea.vmem [#allocation14], %s3758_s18 }
  0x8d   : > { %s643_s25 = sshll.u32 %s636_s15, 4  ;;  %s3746_s20 = sadd.s32 4294967294, %s4732_s28   ;;  %s5066_s25 = int_to_ptr.vmem [resolvable:$true] %s643_s25 }
  0x8e   : > { %s52_s8 = sadd.s32 1, %s4728_s27  ;;  %p6019_p11 = scmp.ne.s32.totalorder %s6003_s16, 0 }
  0x8f   : > { %s59_s9 = sadd.s32 1, %s4712_s23  ;;  %p66_p5 = scmp.ne.s32.totalorder %s4712_s23, %s4708_s22 }
  0x90   : > { %s6083_s8 = smov (!%p6019_p11, %s52_s8), %s4728_s27  ;;  %p72_p2 = scmp.ne.s32.totalorder %s4708_s22, %s4704_s21 }
  0x91   : > { %p54_p1 = scmp.ge.s32.totalorder %s6083_s8, 2  ;;  %p6020_p7 = scmp.eq.s32.totalorder %s4732_s28, 0 }
  0x92   : > { %s5062_s19 = scalar_lea.hbm %s6018_s11, %s3904_s24  ;;  %p450_p3 = scmp.eq.s32.totalorder %s4892_s29, 3 }
  0x93   : > { %p5080_p8 = por %p6020_p7, %p66_p5  ;;  %s6085_s8 = smov (%p54_p1, %s6083_s8), 0 }
  0x94   : > { %6022 = sst [smem:[#allocation35_spill]] %s6085_s8  ;;  %p6023_p6 = scmp.eq.s32.totalorder %s4892_s29, 0 }
  0x95   : > { %p5093_p10 = por %p450_p3, %p66_p5  ;;  %s56_s24 = ssub.s32 %s4728_s27, %s6085_s8 }
  0x96   : > { %p5089_p0 = por %p6023_p6, %p72_p2  ;;  %p456_p13 = scmp.eq.s32.totalorder %s3746_s20, 3 }
  0x97   : > { %s6025_s18 = scalar_select %p5093_p10, 1, 0 }
  0x98   : > { %s6024_s16 = scalar_select %p5089_p0, 1, 0 }
  0x99   : > { %6026 = sst [smem:[#allocation36_spill]] %s6025_s18  ;;  %p57_p4 = scmp.eq.s32.totalorder %s56_s24, 0 }
  0x9a   : > { %s482_s14 = sand.u32 1, %s4712_s23   ;;  %p5100_p11 = por %p456_p13, %p72_p2 }
  0x9b   : > { %s5105_s30 = scalar_select %p57_p4, %s4712_s23, %s59_s9  }
  0x9c   : > { %s6027_s5 = scalar_select %p5100_p11, 1, 0 }
  0x9d   : > { %6029 = sst [smem:[#allocation38_spill]] %s5105_s30  ;;  %s3749_s6 = sshll.u32 %s482_s14, 4 }
  0x9e   : > { %6028 = sst [smem:[#allocation37_spill]] %s6027_s5  ;;  %s3902_s1 = sshll.u32 %s4728_s27, 8 }
  0x9f   : > { %s6030_s0 = sld [smem:[#allocation39_spill]]  ;;  %s486_s20 = scalar_lea.vmem [#allocation3], %s3749_s6 }
  0xa0   : > { %s493_s24 = sshll.u32 %s486_s20, 4  ;;  %p6031_p5 = scmp.lt.s32.totalorder %s4732_s28, 4  ;;  %s5121_s24 = int_to_ptr.vmem [resolvable:$true] %s493_s24 }
  0xa1   : > { %s5123_s9 = scalar_lea.sflag [#allocation4], %s482_s14 }
  0xa2   : > { %p5117_p1 = pnand %p6031_p5, %p5080_p8 }
  0xa4   : > { %p4480_p7 = pneg %p5117_p1 }
  0xa5   : > { %s5111_s21 = scalar_lea.hbm %s6030_s0, %s3902_s1  ;;  %s4483_s1 = scalar_lea.hbm %s6030_s0, 512 }
  0xa6   : > { %s4478_s4 = scalar_lea.hbm %s5111_s21, 256  ;;  %p4484_p8 = scmp.lt.u32.totalorder %s5111_s21, %s6030_s0 }
  0xa7   : > { %p4479_p2 = scmp.ne.s32.totalorder %s5111_s21, %s4478_s4  ;;  %p4485_p13 = scmp.lt.u32.totalorder %s4483_s1, %s4478_s4 }
  0xa8   : > { %p4487_p5 = scmp.lt.u32.totalorder %s4478_s4, %s5111_s21 }
  0xa9   : > { %p4481_p3 = pnand %p4480_p7, %p4479_p2  ;;  %p4486_p4 = por %p4485_p13, %p4484_p8 }
  0xab   : > { %p4482_p6 = pneg %p4481_p3  ;;  %p4488_p11 = por %p4487_p5, %p4486_p4 }
  0xad   : > { %p4489_p10 = pnand %p4488_p11, %p4482_p6 }
  0xaf   : > { %4492 = shalt.err (!%p4489_p10)
}
  0xb0   : > { %s4493_s14 = scalar_lea.vmem %s5121_s24, 256  ;;  %s4741_s3 = smov [#allocation3]  }
  0xb1   : > { %p4494_p2 = scmp.ne.s32.totalorder %s5121_s24, %s4493_s14  ;;  %s4498_s6 = sshll.u32 %s4741_s3, 4  ;;  %s4499_s6 = int_to_ptr.vmem [resolvable:$false] %s4498_s6 }
  0xb2   : > { %s4500_s15 = scalar_lea.vmem %s4499_s6, 512  ;;  %p4501_p9 = scmp.lt.s32.totalorder %s5121_s24, %s4499_s6 }
  0xb3   : > { %p4496_p3 = pnand %p4494_p2, %p4480_p7  ;;  %p4502_p8 = scmp.lt.s32.totalorder %s4500_s15, %s4493_s14 }
  0xb5   : > { %p4497_p0 = pneg %p4496_p3  ;;  %p4503_p13 = por %p4502_p8, %p4501_p9 }
  0xb7   : > { %p4504_p4 = pnand %p4503_p13, %p4497_p0 }
  0xb9   : > { %4507 = shalt.err (!%p4504_p4)
}
  0xba   : > { %s4742_s4 = smov 128   ;;  %s4743_s1 = smov 8  }
  0xbb   : > { %4064 = dma.hbm_to_vmem [thread:$0]  (!%p5117_p1), %s5111_s21, 256, %s5121_s24, %s5123_s9, %s4742_s4, %s4742_s4, %s4743_s1  }
  0xbc   : > { %s3755_s20 = sshll.u32 %s4927_s12, 6  ;;  %s523_s14 = scalar_lea.vmem [#allocation8], %s4927_s12 }
  0xbd   : > { %s530_s3 = sshll.u32 %s523_s14, 4  ;;  %s3903_s6 = sshll.u32 %s4724_s26, 10  ;;  %s531_s3 = int_to_ptr.vmem [resolvable:$true] %s530_s3 }
  0xbe   : > { %s4508_s15 = scalar_lea.hbm %s4947_s10, 16  ;;  %s4513_s30 = scalar_lea.hbm %s6010_s2, 32 }
  0xbf   : > { %p4509_p9 = scmp.ne.s32.totalorder %s4947_s10, %s4508_s15  ;;  %p4514_p11 = scmp.lt.u32.totalorder %s4947_s10, %s6010_s2 }
  0xc0   : > { %p4515_p7 = scmp.lt.u32.totalorder %s4513_s30, %s4508_s15  ;;  %p4517_p6 = scmp.lt.u32.totalorder %s4508_s15, %s4947_s10 }
  0xc1   : > { %p4511_p0 = pnand %p4509_p9, %p4955_p12 }
  0xc2   : > { %p4516_p1 = por %p4515_p7, %p4514_p11 }
  0xc3   : > { %p4512_p10 = pneg %p4511_p0 }
  0xc4   : > { %p4518_p5 = por %p4517_p6, %p4516_p1 }
  0xc6   : > { %p4519_p2 = pnand %p4518_p5, %p4512_p10 }
  0xc8   : > { %4522 = shalt.err (!%p4519_p2)
}
  0xc9   : > { %s4523_s21 = scalar_lea.vmem %s531_s3, 16  ;;  %s4744_s8 = smov [#allocation8]  }
  0xca   : > { %p4524_p3 = scmp.ne.s32.totalorder %s531_s3, %s4523_s21  ;;  %s4528_s24 = sshll.u32 %s4744_s8, 4  ;;  %s4529_s24 = int_to_ptr.vmem [resolvable:$false] %s4528_s24 }
  0xcb   : > { %s4530_s0 = scalar_lea.vmem %s4529_s24, 32  ;;  %p4531_p4 = scmp.lt.s32.totalorder %s531_s3, %s4529_s24 }
  0xcc   : > { %p4526_p8 = pnand %p4524_p3, %p4955_p12  ;;  %p4532_p9 = scmp.lt.s32.totalorder %s4530_s0, %s4523_s21 }
  0xce   : > { %p4527_p13 = pneg %p4526_p8  ;;  %p4533_p0 = por %p4532_p9, %p4531_p4 }
  0xd0   : > { %p4534_p7 = pnand %p4533_p0, %p4527_p13 }
  0xd2   : > { %4537 = shalt.err (!%p4534_p7)
}
  0xd3   : > { %p6033_p11 = scmp.ne.s32.totalorder %s6009_s17, 0  ;;  %s6034_s23 = scalar_lea.sflag [#allocation7], %s4924_s13 }
  0xd4   : > { %s6035_s30 = sld [smem:[#allocation44_spill]]  ;;  %s569_s4 = scalar_lea.vmem [#allocation11], %s3755_s20 }
  0xd5   : > { %4070 = dma.hbm_to_vmem [thread:$0]  (!%p6033_p11), %s4947_s10, 16, %s531_s3, %s6034_s23  }
  0xd6   : > { %s576_s1 = sshll.u32 %s569_s4, 4  ;;  %s5180_s1 = int_to_ptr.vmem [resolvable:$true] %s576_s1 }
  0xda   : > { %s5176_s9 = scalar_lea.hbm %s6035_s30, %s3903_s6  ;;  %s4543_s15 = scalar_lea.hbm %s6035_s30, 2048 }
  0xdb   : > { %s4538_s14 = scalar_lea.hbm %s5176_s9, 1024  ;;  %p4544_p5 = scmp.lt.u32.totalorder %s5176_s9, %s6035_s30 }
  0xdc   : > { %p4539_p10 = scmp.ne.s32.totalorder %s5176_s9, %s4538_s14  ;;  %p4545_p2 = scmp.lt.u32.totalorder %s4543_s15, %s4538_s14 }
  0xdd   : > { %p4547_p8 = scmp.lt.u32.totalorder %s4538_s14, %s5176_s9 }
  0xde   : > { %p4541_p1 = pnand %p4539_p10, %p4955_p12  ;;  %p4546_p3 = por %p4545_p2, %p4544_p5 }
  0xe0   : > { %p4542_p6 = pneg %p4541_p1  ;;  %p4548_p13 = por %p4547_p8, %p4546_p3 }
  0xe2   : > { %p4549_p4 = pnand %p4548_p13, %p4542_p6 }
  0xe4   : > { %4552 = shalt.err (!%p4549_p4)
}
  0xe5   : > { %s4553_s12 = scalar_lea.vmem %s5180_s1, 1024  ;;  %s4745_s20 = smov [#allocation11]  }
  0xe6   : > { %p4554_p9 = scmp.ne.s32.totalorder %s5180_s1, %s4553_s12  ;;  %s4558_s8 = sshll.u32 %s4745_s20, 4  ;;  %s4559_s8 = int_to_ptr.vmem [resolvable:$false] %s4558_s8 }
  0xe7   : > { %s4560_s24 = scalar_lea.vmem %s4559_s8, 2048  ;;  %p4561_p10 = scmp.lt.s32.totalorder %s5180_s1, %s4559_s8 }
  0xe8   : > { %p4556_p0 = pnand %p4554_p9, %p4955_p12  ;;  %p4562_p1 = scmp.lt.s32.totalorder %s4560_s24, %s4553_s12 }
  0xea   : > { %p4557_p7 = pneg %p4556_p0  ;;  %p4563_p5 = por %p4562_p1, %p4561_p10 }
  0xec   : > { %p4564_p2 = pnand %p4563_p5, %p4557_p7 }
  0xee   : > { %4567 = shalt.err (!%p4564_p2)
}
  0xef   : > { %s4746_s0 = smov 64   ;;  %s4747_s23 = smov 4  }
  0xf0   : > { %s6036_s27 = scalar_lea.sflag [#allocation10], %s4924_s13  ;;  %s4568_s5 = scalar_lea.hbm %s5062_s19, 4096 }
  0xf1   : > { %4076 = dma.hbm_to_vmem [thread:$0]  (!%p6033_p11), %s5176_s9, 1024, %s5180_s1, %s6036_s27, %s4746_s0, %s4746_s0, %s4747_s23  }
  0xf2   : > { %p4569_p6 = scmp.ne.s32.totalorder %s5062_s19, %s4568_s5  ;;  %s4573_s10 = scalar_lea.hbm %s6018_s11, 8192 }
  0xf3   : > { %p4574_p13 = scmp.lt.u32.totalorder %s5062_s19, %s6018_s11  ;;  %p4575_p4 = scmp.lt.u32.totalorder %s4573_s10, %s4568_s5 }
  0xf4   : > { %p4571_p3 = pnand %p4569_p6, %p4955_p12  ;;  %p4577_p0 = scmp.lt.u32.totalorder %s4568_s5, %s5062_s19 }
  0xf5   : > { %p4576_p9 = por %p4575_p4, %p4574_p13 }
  0xf6   : > { %p4572_p8 = pneg %p4571_p3 }
  0xf7   : > { %p4578_p7 = por %p4577_p0, %p4576_p9 }
  0xf9   : > { %p4579_p10 = pnand %p4578_p7, %p4572_p8 }
  0xfb   : > { %4582 = shalt.err (!%p4579_p10)
}
  0xfc   : > { %s4583_s9 = scalar_lea.vmem %s5066_s25, 4096  ;;  %s4748_s1 = smov [#allocation14]  }
  0xfd   : > { %p4584_p1 = scmp.ne.s32.totalorder %s5066_s25, %s4583_s9  ;;  %s4588_s6 = sshll.u32 %s4748_s1, 4  ;;  %s4589_s6 = int_to_ptr.vmem [resolvable:$false] %s4588_s6 }
  0xfe   : > { %s4590_s21 = scalar_lea.vmem %s4589_s6, 8192  ;;  %p4591_p6 = scmp.lt.s32.totalorder %s5066_s25, %s4589_s6 }
  0xff   : > { %p4586_p5 = pnand %p4584_p1, %p4955_p12  ;;  %p4592_p3 = scmp.lt.s32.totalorder %s4590_s21, %s4583_s9 }
 0x101   : > { %p4587_p2 = pneg %p4586_p5  ;;  %p4593_p13 = por %p4592_p3, %p4591_p6 }
 0x103   : > { %p4594_p4 = pnand %p4593_p13, %p4587_p2 }
 0x105   : > { %4597 = shalt.err (!%p4594_p4)
}
 0x106   : > { %s6037_s12 = scalar_lea.sflag [#allocation13], %s4924_s13  ;;  %s6038_s7 = sld [smem:[#allocation34_spill]] }
 0x107   : > { %4082 = dma.hbm_to_vmem [thread:$0]  (!%p6033_p11), %s5062_s19, 4096, %s5066_s25, %s6037_s12, %s4746_s0, %s4746_s0, %s4747_s23  }
 0x10c   : > { %p6039_p12 = scmp.ne.s32.totalorder %s6038_s7, 0 }
 0x10d   : > { %s5237_s20 = sand.u32 (!%p6039_p12), 1, %s4708_s22   ;;  %p6040_p8 = scmp.ne.s32.totalorder (!%p6039_p12), %s6024_s16, 0 }
 0x10e   : > { %661 = sbr.rel (%p6039_p12) target bundleno = 3142 (0xc46), region = 80  ;;  %s5969_s8 = sshll.u32 (!%p6039_p12), %s5237_s20, 4 }
 0x10f   : > { %s664_s17 = scalar_lea.sflag (!%p6039_p12), [#allocation4], %s5237_s20  ;;  %s5243_s24 = scalar_lea.vmem (!%p6039_p12), [#allocation3], %s5969_s8 }
 0x115   : > { %4671 = dma.done.wait (%p6040_p8), %s664_s17, 256  }
 0x116   : > { %4673 = vsyncadd (%p6040_p8), %s664_s17, 4294967040  ;;  %s6041_s13 = sld [smem:[#allocation21_spill]]  ;;  %s6042_s19 = sld [smem:[#allocation32_spill]] }
 0x117   : > { %s672_s25 = sand.u32 1, %s4892_s29  }
 0x118   : > { %s673_s23 = scalar_lea.sflag [#allocation7], %s672_s25 }
 0x11c   : > { %s5251_s0 = sand.u32 1, %s6041_s13   ;;  %p6043_p11 = scmp.ne.s32.totalorder %s6042_s19, 0 }
 0x11e   : > { %4675 = dma.done.wait (%p6043_p11), %s673_s23, 32  }
 0x11f   : > { %4677 = vsyncadd (%p6043_p11), %s673_s23, 4294967264  ;;  %s4043_s5 = smul.u32 192, %s5251_s0  ;;  %s689_s4 = scalar_lea.sflag [#allocation10], %s672_s25 }
 0x121   : > { %s5260_s14 = scalar_lea.vmem [#allocation9], %s4043_s5 }
 0x122   : > { %4679 = dma.done.wait (%p6043_p11), %s689_s4, 4096  }
 0x123   : > { %4681 = vsyncadd (%p6043_p11), %s689_s4, 4294963200  ;;  %s3766_s29 = sshll.u32 %s5251_s0, 6  ;;  %s3767_s10 = sshll.u32 %s5251_s0, 8 }
 0x124   : > { %s5268_s3 = scalar_lea.vmem [#allocation11], %s3766_s29  ;;  %s707_s15 = scalar_lea.sflag [#allocation13], %s672_s25 }
 0x125   : > { %s5270_s9 = scalar_lea.vmem [#allocation12], %s3767_s10 }
 0x126   : > { %4683 = dma.done.wait (%p6043_p11), %s707_s15, 8192  }
 0x127   : > { %4685 = vsyncadd (%p6043_p11), %s707_s15, 4294959104  ;;  %s6044_s1 = sld [smem:[#allocation26_spill]]  ;;  %s6045_s17 = sld [smem:[#allocation45_spill]] }
 0x128   : > { %s6046_s23 = sld [smem:[#allocation46_spill]]  ;;  %s6047_s15 = sld [smem:[#allocation47_spill]] }
 0x129   : > { %s6048_s2 = sld [smem:[#allocation43_spill]]  ;;  %s6049_s28 = sld [smem:[#allocation49_spill]] }
 0x12a   : > { %s5308_s19 = scalar_lea.vmem [#allocation14], %s3767_s10 }
 0x12d   : > { %p814_p9 = scmp.lt.s32.totalorder %s6044_s1, 1  ;;  %p3771_p0 = scmp.ne.s32.totalorder %s6044_s1, 0 }
 0x12e   : > { %v839_v0 = vld [vmem:[%s5243_s24] sm:$0xff] (!%p3771_p0)  ;;  %v840_v1 = vld [vmem:[%s5243_s24 + $0x8] sm:$0xff] (!%p3771_p0) }
 0x12f   : > { %s5278_s6 = scalar_select %p814_p9, %s6044_s1, 1 }
 0x130   : > { %841 = vst [vmem:[#allocation2] sm:$0xff] (!%p3771_p0), %v839_v0  ;;  %842 = vst [vmem:[#allocation2 + $0x8] sm:$0xff] (!%p3771_p0), %v840_v1 }
 0x131   : > { %s4044_s21 = smul.u32 3, %s5278_s6  ;;  %s820_s13 = scalar_lea.vmem %s6045_s17, %s5278_s6 }
 0x132   : > { %s823_s5 = scalar_lea.vmem %s6046_s23, %s5278_s6  ;;  %s826_s16 = scalar_lea.vmem %s6047_s15, %s5278_s6 }
 0x133   : > { %s5296_s11 = scalar_lea.vmem %s6048_s2, %s4044_s21  ;;  %s3770_s30 = sshll.u32 %s5278_s6, 2 }
 0x134   : > { %s5302_s18 = scalar_lea.vmem %s6049_s28, %s3770_s30  ;;  %s6050_s17 = sld [smem:[#allocation51_spill]] }
 0x135   : > { %s6051_s23 = sshll.u32 %s5237_s20, 4  ;;  %838 = sbr.rel (%p3771_p0) target bundleno = 316 (0x13c), region = 112 }
 0x136   : > { %s5312_s4 = scalar_lea.vmem [#allocation15], %s6051_s23 }
 0x13a   : > { %s833_s25 = scalar_lea.vmem %s6050_s17, %s5278_s6 }
 0x13c PF: > { %v843_v2 = vld [vmem:[#allocation2] sm:$0xff]  ;;  %v844_v3 = vld [vmem:[#allocation2 + $0x8] sm:$0xff]  ;;  %v4749_v6 = vmov 0.0   ;;  %v4202_v8 = vld [vmem:[%s5260_s14 + $0x1c] ss:$12 sps:$4 sm:$0xff]   ;;  %v4750_v32 = vmov 0   ;;  %v921_v55 = vlaneseq }
 0x13d   : > { %847 = vadd.xlane.f32.xlu0 %v843_v2  ;;  %v4198_v4 = vld [vmem:[%s5260_s14 + $0x4] ss:$12 sps:$4 sm:$0xff]   ;;  %v4200_v5 = vld [vmem:[%s5260_s14] ss:$12 sps:$4 sm:$0xff]   ;;  %3977 = vmatprep.subr.bf16.mxu1 %v4749_v6  ;;  %v4201_v7 = vld [vmem:[%s5260_s14 + $0x8] ss:$12 sps:$4 sm:$0xff]  }
 0x13e   : > { %1064 = vmatprep.subr.bf16.mxu0 %v4198_v4  ;;  %3978 = vmatpush3.bf16.msra.mxu1 %v4201_v7  ;;  %v4204_v17 = vld [vmem:[%s5260_s14 + $0x18] ss:$12 sps:$4 sm:$0xff]   ;;  %v4205_v18 = vld [vmem:[%s5260_s14 + $0x20] ss:$12 sps:$4 sm:$0xff]   ;;  %v4208_v20 = vld [vmem:[%s5260_s14 + $0x30] ss:$12 sps:$4 sm:$0xff]  }
 0x13f   : > { %1065 = vmatpush1.bf16.msra.mxu0 %v4200_v5  ;;  %3979 = vmatprep.subr.bf16.mxu1 %v4749_v6  ;;  %v4206_v19 = vld [vmem:[%s5260_s14 + $0x34] ss:$12 sps:$4 sm:$0xff]   ;;  %v4209_v21 = vld [vmem:[%s5260_s14 + $0x38] ss:$12 sps:$4 sm:$0xff]   ;;  %v4213_v24 = vld [vmem:[%s5260_s14 + $0x50] ss:$12 sps:$4 sm:$0xff]  }
 0x140   : > { %1066 = vmatprep.subr.bf16.mxu0 %v4202_v8  ;;  %v4210_v22 = vld [vmem:[%s5260_s14 + $0x4c] ss:$12 sps:$4 sm:$0xff]   ;;  %v4212_v23 = vld [vmem:[%s5260_s14 + $0x48] ss:$12 sps:$4 sm:$0xff]   ;;  %v4214_v25 = vld [vmem:[%s5260_s14 + $0x64] ss:$12 sps:$4 sm:$0xff]   ;;  %1096 = vmatprep.mubr.bf16.mxu0 %v4750_v32 }
 0x141   : > { %849 = vadd.xlane.f32.xlu0 %v844_v3  ;;  %v4216_v26 = vld [vmem:[%s5260_s14 + $0x60] ss:$12 sps:$4 sm:$0xff]   ;;  %v4217_v27 = vld [vmem:[%s5260_s14 + $0x68] ss:$12 sps:$4 sm:$0xff]   ;;  %v4220_v29 = vld [vmem:[%s5260_s14 + $0x78] ss:$12 sps:$4 sm:$0xff]  }
 0x142   : > { %3980 = vmatpush3.bf16.msra.mxu1 %v4205_v18  ;;  %v4218_v28 = vld [vmem:[%s5260_s14 + $0x7c] ss:$12 sps:$4 sm:$0xff]   ;;  %v4221_v30 = vld [vmem:[%s5260_s14 + $0x80] ss:$12 sps:$4 sm:$0xff]   ;;  %vm4751_vm0 = vmmov 0   ;;  %s6052_s2 = scalar_lea.vmem [#allocation6], %s5251_s0 }
 0x143   : > { %1067 = vmatpush1.bf16.msra.mxu0 %v4204_v17  ;;  %3981 = vmatprep.subr.bf16.mxu1 %v4749_v6  ;;  %v4222_v31 = vld [vmem:[%s5260_s14 + $0x94] ss:$12 sps:$4 sm:$0xff]   ;;  %v4224_v33 = vld [vmem:[%s5260_s14 + $0x90] ss:$12 sps:$4 sm:$0xff]   ;;  %v4225_v34 = vld [vmem:[%s5260_s14 + $0x98] ss:$12 sps:$4 sm:$0xff]  }
 0x144   : > { %1068 = vmatprep.subr.bf16.mxu0 %v4206_v19  ;;  %3993 = vmatprep.mubr.msk.bf16.mxu1 %vm4751_vm0, %v4749_v6  ;;  %v4226_v35 = vld [vmem:[%s5260_s14 + $0xac] ss:$12 sps:$4 sm:$0xff]   ;;  %v4228_v36 = vld [vmem:[%s5260_s14 + $0xa8] ss:$12 sps:$4 sm:$0xff]   ;;  %v4229_v37 = vld [vmem:[%s5260_s14 + $0xb0] ss:$12 sps:$4 sm:$0xff]  }
 0x145   : > { %v3772_v46 = vld [vmem:[%s6052_s2] ss:$0 sm:$0xff]  ;;  %s6053_s22 = scalar_lea.vmem [#allocation8], %s5251_s0  ;;  %v5373_v56 = vshrl.u32 %v921_v55, 7  ;;  %vm1876_vm1 = vcmask 523264   ;;  %vm1986_vm3 = vcmask 130048  }
 0x146   : > { %3982 = vmatpush3.bf16.msra.mxu1 %v4209_v21  ;;  %v3773_v50 = vld [vmem:[%s6053_s22] ss:$0 sm:$0xff] }
 0x147   : > { %1069 = vmatpush1.bf16.msra.mxu0 %v4208_v20  ;;  %3983 = vmatprep.subr.bf16.mxu1 %v4749_v6  ;;  %v927_v57 = vsub.s32 1, %v5373_v56  ;;  %v5377_v58 = vld [vmem:[%s5296_s11] sm:$0x7]  ;;  %v923_v59 = vsub.s32 0, %v5373_v56  ;;  %s4752_s11 = smov 64  }
 0x148   : > { %1070 = vmatprep.subr.bf16.mxu0 %v4210_v22 }
 0x149   : > { %v928_v60 = vrot.slane %v5377_v58, %v927_v57  ;;  %v924_v61 = vrot.slane %v5377_v58, %v923_v59 }
 0x14a   : > { %3984 = vmatpush3.bf16.msra.mxu1 %v4213_v24 }
 0x14b   : > { %1071 = vmatpush1.bf16.msra.mxu0 %v4212_v23  ;;  %3985 = vmatprep.subr.bf16.mxu1 %v4749_v6 }
 0x14c   : > { %1072 = vmatprep.subr.bf16.mxu0 %v4214_v25 }
 0x14e   : > { %3986 = vmatpush3.bf16.msra.mxu1 %v4217_v27 }
 0x14f   : > { %1073 = vmatpush1.bf16.msra.mxu0 %v4216_v26  ;;  %3987 = vmatprep.subr.bf16.mxu1 %v4749_v6 }
 0x150   : > { %1074 = vmatprep.subr.bf16.mxu0 %v4218_v28 }
 0x152   : > { %3988 = vmatpush3.bf16.msra.mxu1 %v4221_v30 }
 0x153   : > { %1075 = vmatpush1.bf16.msra.mxu0 %v4220_v29  ;;  %3989 = vmatprep.subr.bf16.mxu1 %v4749_v6 }
 0x154   : > { %1076 = vmatprep.subr.bf16.mxu0 %v4222_v31 }
 0x156   : > { %3990 = vmatpush3.bf16.msra.mxu1 %v4225_v34 }
 0x157   : > { %1077 = vmatpush1.bf16.msra.mxu0 %v4224_v33  ;;  %3991 = vmatprep.subr.bf16.mxu1 %v4749_v6 }
 0x158   : > { %1078 = vmatprep.subr.bf16.mxu0 %v4226_v35 }
 0x15a   : > { %3992 = vmatpush3.bf16.msra.mxu1 %v4229_v37 }
 0x15b   : > { %1079 = vmatpush1.bf16.msra.mxu0 %v4228_v36  ;;  %3997 = vmatprep.subr.bf16.mxu1 %v4749_v6 }
 0x15c   : > { %4021 = vmatprep.subr.bf16.mxu0 %v4749_v6 }
 0x1ca   : > { %v848_v9 = vpop.xlane.xlu0 %847 }
 0x1cb   : > { %v852_v10 = vmul.f32 0.0078125, %v848_v9 }
 0x1cd   : > { %v5323_v11 = vsub.f32 %v843_v2, %v852_v10 }
 0x1ce   : > { %v850_v12 = vpop.xlane.xlu0 %849 }
 0x1cf   : > { %v853_v13 = vmul.f32 0.0078125, %v850_v12  ;;  %v856_v14 = vmul.f32 %v5323_v11, %v5323_v11 }
 0x1d1   : > { %v5327_v15 = vsub.f32 %v844_v3, %v853_v13  ;;  %858 = vadd.xlane.f32.xlu1 %v856_v14  ;;  %v4753_v13 = vmov 1983009808  }
 0x1d2   : > { %v1160_v14 = vunpack.c.l.s4 %v4753_v13 }
 0x1d3   : > { %v857_v16 = vmul.f32 %v5327_v15, %v5327_v15 }
 0x1d5   : > { %860 = vadd.xlane.f32.xlu1 %v857_v16  ;;  %v4754_v16 = vmov 1934713408  }
 0x1d6   : > { %v1191_v17 = vunpack.c.l.s4 %v4754_v16 }
 0x1d8   : > { %v1192_v19 = vunpack.c.0.s8 %v1191_v17 }
 0x1da   : > { %v5400_v23 = vsub.s32 %v1192_v19, %v5373_v56 }
 0x25e   : > { %v859_v38 = vpop.xlane.xlu1 %858 }
 0x25f   : > { %v862_v39 = vmul.f32 0.0078125, %v859_v38 }
 0x261   : > { %v864_v40 = vadd.f32 1e-05, %v862_v39 }
 0x262   : > { %v861_v41 = vpop.xlane.xlu1 %860 }
 0x263   : > { %4318 = vrsqrt.f32 %v864_v40  ;;  %v863_v42 = vmul.f32 0.0078125, %v861_v41 }
 0x265   : > { %v865_v43 = vadd.f32 1e-05, %v863_v42 }
 0x267   : > { %4320 = vrsqrt.f32 %v865_v43 }
 0x26d   : > { %v4319_v44 = vpop.eup %4318 }
 0x26e   : > { %v868_v45 = vmul.f32 %v4319_v44, %v5323_v11 }
 0x270   : > { %v876_v49 = vmul.f32 %v3772_v46, %v868_v45 }
 0x271   : > { %v4321_v47 = vpop.eup %4320 }
 0x272   : > { %v869_v48 = vmul.f32 %v4321_v47, %v5327_v15  ;;  %v884_v52 = vadd.f32 %v3773_v50, %v876_v49  ;;  %v1161_v15 = vunpack.c.0.s8 %v1160_v14 }
 0x274   : > { %v877_v51 = vmul.f32 %v3772_v46, %v869_v48  ;;  %v5395_v18 = vsub.s32 %v1161_v15, %v5373_v56 }
 0x276   : > { %v885_v53 = vadd.f32 %v3773_v50, %v877_v51 }
 0x278   : > { %v886_v54 = vpack.c.bf16 %v885_v53, %v884_v52 }
 0x27a   : > { %1097 = vmatmul.mubr.bf16.vlgmr.msra.gmra.mrb[0].mxu0 %v886_v54  ;;  %3994 = vmatmul.mubr.bf16.vlgmr.msra.gmra.mrb[0].mxu1 %v886_v54 }
 0x27b   : > { %3999 = vmatprep.mubr.msk.bf16.mxu1 %vm4751_vm0, %v4749_v6  ;;  %4037 = vmatprep.mubr.msk.bf16.mxu0 %vm4751_vm0, %v4749_v6 }
 0x34d   : > { %v1098_v62 = vpop.f32.mrb[0].mxu0  ;;  %v5386_v63 = vpop.f32.mrb[0].mxu1 }
 0x34e   : > { %v1100_v0 = vpop.f32.mrb[1].mxu0  ;;  %v3995_v1 = vpop.f32.mrb[1].mxu1  ;;  %v1099_v8 = vadd.f32 %v1098_v62, %v924_v61 }
 0x34f   : > { %v1101_v2 = vadd.f32 %v1100_v0, %v928_v60  ;;  %v1102_v3 = vpop.f32.mrb[2].mxu0  ;;  %v5388_v4 = vpop.f32.mrb[2].mxu1 }
 0x350   : > { %v1104_v5 = vpop.f32.mrb[3].mxu0  ;;  %v3996_v7 = vpop.f32.mrb[3].mxu1  ;;  %v1148_v10 = vmul.f32 0.125, %v1099_v8  ;;  %v1103_v11 = vadd.f32 %v1102_v3, %v924_v61 }
 0x351   : > { %v1105_v9 = vadd.f32 %v1104_v5, %v928_v60  ;;  %1394 = vrot.lane.b32.xlu0 %v1101_v2, %s4752_s11  ;;  %v1400_v20 = vcombine.high %v1101_v2, %v4749_v6  ;;  %v1407_v24 = vrot.slane %v1101_v2, %v5395_v18 }
 0x352   : > { %v1149_v12 = vmul.f32 0.125, %v1103_v11  ;;  %v1158_v21 = vcombine.high %v1148_v10, %v4749_v6  ;;  %v1165_v27 = vrot.slane %v1148_v10, %v5395_v18 }
 0x353   : > { %1396 = vrot.lane.b32.xlu1 %v1105_v9, %s4752_s11  ;;  %v1414_v28 = vrot.slane %v1400_v20, %v5395_v18  ;;  %v1466_v29 = vcombine.high %v1105_v9, %v4749_v6  ;;  %v1473_v38 = vrot.slane %v1105_v9, %v5395_v18 }
 0x354   : > { %v1172_v36 = vrot.slane %v1158_v21, %v5395_v18  ;;  %v1224_v37 = vcombine.high %v1149_v12, %v4749_v6  ;;  %v1231_v62 = vrot.slane %v1149_v12, %v5395_v18 }
 0x355   : > { %v1480_v44 = vrot.slane %v1466_v29, %v5395_v18 }
 0x356   : > { %v1238_v0 = vrot.slane %v1224_v37, %v5395_v18 }
 0x357   : > { %1152 = vrot.lane.b32.xlu1 %v1148_v10, %s4752_s11 }
 0x35b   : > { %1154 = vrot.lane.b32.xlu1 %v1149_v12, %s4752_s11 }
 0x3c3   : > { %v1395_v22 = vpop.permute.xlu0 %1394 }
 0x3c4   : > { %v1415_v25 = vcombine.high %v1395_v22, %v4749_v6  ;;  %v1422_v26 = vrot.slane %v1395_v22, %v5395_v18 }
 0x3c5   : > { %v1397_v30 = vpop.permute.xlu1 %1396 }
 0x3c6   : > { %v1429_v31 = vrot.slane %v1415_v25, %v5395_v18  ;;  %v1430_v33 = vcombine.low %v1407_v24, %v1422_v26  ;;  %v1431_v34 = vcombine.high %v1407_v24, %v1422_v26  ;;  %v1481_v35 = vcombine.high %v1397_v30, %v4749_v6 }
 0x3c7   : > { %v1488_v39 = vrot.slane %v1397_v30, %v5395_v18 }
 0x3c8   : > { %v1438_v40 = vrot.slane %v1430_v33, %v5400_v23  ;;  %v1445_v41 = vrot.slane %v1431_v34, %v5400_v23  ;;  %v1446_v42 = vcombine.low %v1414_v28, %v1429_v31  ;;  %v1447_v43 = vcombine.high %v1414_v28, %v1429_v31 }
 0x3c9   : > { %v1495_v45 = vrot.slane %v1481_v35, %v5395_v18  ;;  %v1496_v46 = vcombine.low %v1473_v38, %v1488_v39  ;;  %v1497_v47 = vcombine.high %v1473_v38, %v1488_v39  ;;  %v1153_v48 = vpop.permute.xlu1 %1152 }
 0x3ca   : > { %v1454_v49 = vrot.slane %v1446_v42, %v5400_v23  ;;  %v1461_v50 = vrot.slane %v1447_v43, %v5400_v23  ;;  %v1532_v51 = vcombine.low %v1438_v40, %v1445_v41  ;;  %v3802_v52 = vcombine.high %v1438_v40, %v1445_v41 }
 0x3cb   : > { %v1504_v53 = vrot.slane %v1496_v46, %v5400_v23  ;;  %v1511_v54 = vrot.slane %v1497_v47, %v5400_v23  ;;  %v1512_v60 = vcombine.low %v1480_v44, %v1495_v45  ;;  %v1513_v61 = vcombine.high %v1480_v44, %v1495_v45 }
 0x3cc   : > { %v1548_v1 = vcombine.low %v1454_v49, %v1461_v50  ;;  %v3803_v2 = vcombine.high %v1454_v49, %v1461_v50  ;;  %v1539_v10 = vrot.slane %v1532_v51, %v5395_v18  ;;  %v1547_v11 = vrot.slane %v3802_v52, %v5395_v18 }
 0x3cd   : > { %v1520_v3 = vrot.slane %v1512_v60, %v5400_v23  ;;  %v1527_v5 = vrot.slane %v1513_v61, %v5400_v23  ;;  %v1582_v7 = vcombine.low %v1504_v53, %v1511_v54  ;;  %v3804_v8 = vcombine.high %v1504_v53, %v1511_v54  ;;  %v1155_v9 = vpop.permute.xlu1 %1154 }
 0x3ce   : > { %v1173_v13 = vcombine.high %v1153_v48, %v4749_v6  ;;  %v1180_v14 = vrot.slane %v1153_v48, %v5395_v18  ;;  %v1555_v12 = vrot.slane %v1548_v1, %v5395_v18  ;;  %v1563_v15 = vrot.slane %v3803_v2, %v5395_v18 }
 0x3cf   : > { %v1598_v16 = vcombine.low %v1520_v3, %v1527_v5  ;;  %v3805_v17 = vcombine.high %v1520_v3, %v1527_v5  ;;  %v1239_v22 = vcombine.high %v1155_v9, %v4749_v6  ;;  %v1589_v24 = vrot.slane %v1582_v7, %v5395_v18 }
 0x3d0   : > { %v1187_v19 = vrot.slane %v1173_v13, %v5395_v18  ;;  %v1188_v20 = vcombine.low %v1165_v27, %v1180_v14  ;;  %v1189_v21 = vcombine.high %v1165_v27, %v1180_v14  ;;  %v1597_v25 = vrot.slane %v3804_v8, %v5395_v18 }
 0x3d1   : > { %v1605_v26 = vrot.slane %v1598_v16, %v5395_v18  ;;  %v1246_v28 = vrot.slane %v1155_v9, %v5395_v18  ;;  %v1613_v34 = vrot.slane %v3805_v17, %v5395_v18  ;;  %v1253_v27 = vrot.slane %v1239_v22, %v5395_v18 }
 0x3d2   : > { %v1196_v29 = vrot.slane %v1188_v20, %v5400_v23  ;;  %v1203_v30 = vrot.slane %v1189_v21, %v5400_v23  ;;  %v1204_v31 = vcombine.low %v1172_v36, %v1187_v19  ;;  %v1205_v33 = vcombine.high %v1172_v36, %v1187_v19 }
 0x3d3   : > { %v1254_v35 = vcombine.low %v1231_v62, %v1246_v28  ;;  %v1255_v37 = vcombine.high %v1231_v62, %v1246_v28  ;;  %v1270_v44 = vcombine.low %v1238_v0, %v1253_v27  ;;  %v1271_v45 = vcombine.high %v1238_v0, %v1253_v27 }
 0x3d4   : > { %v1212_v38 = vrot.slane %v1204_v31, %v5400_v23  ;;  %v1219_v39 = vrot.slane %v1205_v33, %v5400_v23  ;;  %v1290_v40 = vcombine.low %v1196_v29, %v1203_v30  ;;  %v3798_v41 = vcombine.high %v1196_v29, %v1203_v30 }
 0x3d5   : > { %v1262_v42 = vrot.slane %v1254_v35, %v5400_v23  ;;  %v1269_v43 = vrot.slane %v1255_v37, %v5400_v23  ;;  %v1278_v49 = vrot.slane %v1270_v44, %v5400_v23  ;;  %v1285_v50 = vrot.slane %v1271_v45, %v5400_v23 }
 0x3d6   : > { %v1297_v36 = vrot.slane %v1290_v40, %v5395_v18  ;;  %v1305_v46 = vrot.slane %v3798_v41, %v5395_v18  ;;  %v1306_v47 = vcombine.low %v1212_v38, %v1219_v39  ;;  %v3799_v48 = vcombine.high %v1212_v38, %v1219_v39 }
 0x3d7   : > { %v1340_v51 = vcombine.low %v1262_v42, %v1269_v43  ;;  %v3800_v52 = vcombine.high %v1262_v42, %v1269_v43  ;;  %v1564_v60 = vcombine.low %v1539_v10, %v1547_v11  ;;  %v1572_v61 = vcombine.low %v1555_v12, %v1563_v15 }
 0x3d8   : > { %v1313_v53 = vrot.slane %v1306_v47, %v5395_v18  ;;  %v1321_v54 = vrot.slane %v3799_v48, %v5395_v18  ;;  %v1356_v1 = vcombine.low %v1278_v49, %v1285_v50  ;;  %v3801_v2 = vcombine.high %v1278_v49, %v1285_v50 }
 0x3d9   : > { %v1347_v62 = vrot.slane %v1340_v51, %v5395_v18  ;;  %v1355_v0 = vrot.slane %v3800_v52, %v5395_v18  ;;  %v1322_v3 = vcombine.low %v1297_v36, %v1305_v46  ;;  %v1579_v7 = vrot.slane %v1572_v61, %v5400_v23 }
 0x3da   : > { %v1330_v5 = vcombine.low %v1313_v53, %v1321_v54  ;;  %v1614_v8 = vcombine.low %v1589_v24, %v1597_v25  ;;  %v1363_v9 = vrot.slane %v1356_v1, %v5395_v18  ;;  %v1371_v13 = vrot.slane %v3801_v2, %v5395_v18 }
 0x3db   : > { %v1372_v14 = vcombine.low %v1347_v62, %v1355_v0  ;;  %v1622_v16 = vcombine.low %v1605_v26, %v1613_v34  ;;  %v1571_v11 = vrot.slane %v1564_v60, %v5400_v23  ;;  %v1329_v19 = vrot.slane %v1322_v3, %v5400_v23 }
 0x3dc   : > { %v1337_v10 = vrot.slane %v1330_v5, %v5400_v23  ;;  %v1380_v12 = vcombine.low %v1363_v9, %v1371_v13  ;;  %v1621_v15 = vrot.slane %v1614_v8, %v5400_v23  ;;  %v1975_v39 = vand.u32 127, %v921_v55 }
 0x3dd   : > { %v1629_v17 = vrot.slane %v1622_v16, %v5400_v23  ;;  %v1580_v20 = vcombine.low %v1571_v11, %v1579_v7  ;;  %v1581_v21 = vcombine.high %v1571_v11, %v1579_v7  ;;  %v1379_v22 = vrot.slane %v1372_v14, %v5400_v23 }
 0x3de   : > { %v1387_v24 = vrot.slane %v1380_v12, %v5400_v23  ;;  %v1338_v26 = vcombine.low %v1329_v19, %v1337_v10  ;;  %v1339_v29 = vcombine.high %v1329_v19, %v1337_v10  ;;  %v1973_v40 = vadd.s32 8, %v5373_v56 }
 0x3df   : > { %v1630_v25 = vcombine.low %v1621_v15, %v1629_v17  ;;  %v1631_v28 = vcombine.high %v1621_v15, %v1629_v17  ;;  %vm1976_vm2 = vcmp.ge.s32.totalorder %v5373_v56, %v1975_v39  ;;  %v931_v54 = vsub.s32 2, %v5373_v56 }
 0x3e0   : > { %v1388_v31 = vcombine.low %v1379_v22, %v1387_v24  ;;  %v1389_v34 = vcombine.high %v1379_v22, %v1387_v24  ;;  %vm1977_vm4 = vcmp.ge.s32.totalorder %v1973_v40, %v1975_v39 }
 0x3e1   : > { %v1632_v30 = vpack.c.bf16 %v1630_v25, %v1580_v20  ;;  %v1633_v33 = vpack.c.bf16 %v1631_v28, %v1581_v21  ;;  %v932_v61 = vrot.slane %v5377_v58, %v931_v54 }
 0x3e2   : > { %v1390_v35 = vpack.c.bf16 %v1388_v31, %v1338_v26  ;;  %v1391_v37 = vpack.c.bf16 %v1389_v34, %v1339_v29 }
 0x3e3   : > { %v1881_v27 = vsel %vm1876_vm1, %v1632_v30, 0  ;;  %v1928_v38 = vsel %vm1876_vm1, %v1633_v33, 0  ;;  %v1145_v62 = vadd.f32 %v5388_v4, %v932_v61  ;;  %v1142_v0 = vadd.f32 %v5386_v63, %v932_v61 }
 0x3e4   : > { %3998 = vmatpush3.bf16.xpose.msra.mxu1 %v1881_v27 }
 0x3e5   : > { %4003 = vmatprep.subr.bf16.mxu1 %v4749_v6  ;;  %v1708_v58 = vcombine.high %v1145_v62, %v4749_v6  ;;  %v1715_v14 = vrot.slane %v1145_v62, %v5395_v18  ;;  %v1642_v29 = vcombine.high %v1142_v0, %v4749_v6  ;;  %v1649_v40 = vrot.slane %v1142_v0, %v5395_v18 }
 0x3e7   : > { %v1722_v11 = vrot.slane %v1708_v58, %v5395_v18 }
 0x3eb   : > { %4000 = vmatmul.mubr.msk.bf16.vlgmr.msra.gmra.mrb[4].mxu1 %vm1876_vm1, %v1390_v35 }
 0x3ec   : > { %4004 = vmatpush3.bf16.xpose.msra.mxu1 %v1928_v38  ;;  %4005 = vmatprep.mubr.msk.bf16.mxu1 %vm4751_vm0, %v4749_v6 }
 0x3ed   : > { %4009 = vmatprep.subr.bf16.mxu1 %v4749_v6 }
 0x3f3   : > { %4006 = vmatmul.mubr.msk.bf16.vlgmr.msra.gmra.mrb[8].mxu1 %vm1876_vm1, %v1391_v37 }
 0x3f4   : > { %4011 = vmatprep.mubr.msk.bf16.mxu1 %vm4751_vm0, %v4749_v6 }
 0x4be   : > { %v1917_v41 = vpop.f32.mrb[4].mxu1 }
 0x4bf   : > { %v1982_v42 = vsel %vm1976_vm2, %v1917_v41, -1e+30  ;;  %v4001_v43 = vpop.f32.mrb[5].mxu1  ;;  %v1656_v41 = vrot.slane %v1642_v29, %v5395_v18 }
 0x4c0   : > { %v1920_v44 = vpop.f32.mrb[6].mxu1  ;;  %v1987_v45 = vsel %vm1986_vm3, %v1982_v42, -inf }
 0x4c1   : > { %v1983_v36 = vsel %vm1977_vm4, %v1920_v44, -1e+30  ;;  %1988 = vmax.xlane.f32.xlu0 %v1987_v45  ;;  %v4002_v46 = vpop.f32.mrb[7].mxu1 }
 0x4c2   : > { %v1990_v47 = vsel %vm1986_vm3, %v1983_v36, -inf }
 0x4c3   : > { %1991 = vmax.xlane.f32.xlu1 %v1990_v47 }
 0x4c6   : > { %v1964_v48 = vpop.f32.mrb[8].mxu1 }
 0x4c7   : > { %v1984_v55 = vsel %vm1976_vm2, %v1964_v48, -1e+30  ;;  %v4007_v49 = vpop.f32.mrb[9].mxu1 }
 0x4c8   : > { %v1967_v50 = vpop.f32.mrb[10].mxu1  ;;  %v1993_v51 = vsel %vm1986_vm3, %v1984_v55, -inf }
 0x4c9   : > { %v1985_v52 = vsel %vm1977_vm4, %v1967_v50, -1e+30  ;;  %1994 = vmax.xlane.f32.xlu0 %v1993_v51  ;;  %v4008_v53 = vpop.f32.mrb[11].mxu1 }
 0x4ca   : > { %v1996_v60 = vsel %vm1986_vm3, %v1985_v52, -inf }
 0x4cd   : > { %1997 = vmax.xlane.f32.xlu0 %v1996_v60 }
 0x4d4   : > { %1638 = vrot.lane.b32.xlu1 %v1145_v62, %s4752_s11 }
 0x4e3   : > { %1636 = vrot.lane.b32.xlu0 %v1142_v0, %s4752_s11 }
 0x54e   : > { %v5489_v1 = vpop.xlane.xlu0 %1988 }
 0x54f   : > { %v1999_v2 = vmax.f32 %v5489_v1, -1e+30 }
 0x550   : > { %v5492_v3 = vpop.xlane.xlu1 %1991 }
 0x551   : > { %v2015_v5 = vsub.f32 %v1982_v42, %v1999_v2  ;;  %v2000_v7 = vmax.f32 %v5492_v3, -1e+30 }
 0x553   : > { %v2019_v4 = vmul.f32 1.442695, %v2015_v5  ;;  %v2016_v8 = vsub.f32 %v1983_v36, %v2000_v7 }
 0x554   : > { %v1639_v63 = vpop.permute.xlu1 %1638 }
 0x555   : > { %v2021_v9 = vmul.f32 1.442695, %v2016_v8  ;;  %v1723_v13 = vcombine.high %v1639_v63, %v4749_v6  ;;  %4322 = vpow2.f32 %v2019_v4  ;;  %v1730_v16 = vrot.slane %v1639_v63, %v5395_v18 }
 0x556   : > { %v5503_v10 = vpop.xlane.xlu0 %1994 }
 0x557   : > { %v1737_v12 = vrot.slane %v1723_v13, %v5395_v18  ;;  %v2001_v15 = vmax.f32 %v5503_v10, -1e+30  ;;  %4324 = vpow2.f32 %v2021_v9  ;;  %v1738_v17 = vcombine.low %v1715_v14, %v1730_v16 }
 0x558   : > { %v1739_v19 = vcombine.high %v1715_v14, %v1730_v16 }
 0x559   : > { %v1754_v20 = vcombine.low %v1722_v11, %v1737_v12  ;;  %v1755_v21 = vcombine.high %v1722_v11, %v1737_v12  ;;  %v2017_v22 = vsub.f32 %v1984_v55, %v2001_v15  ;;  %v1746_v30 = vrot.slane %v1738_v17, %v5400_v23 }
 0x55a   : > { %v5510_v24 = vpop.xlane.xlu0 %1997  ;;  %v1753_v31 = vrot.slane %v1739_v19, %v5400_v23 }
 0x55b   : > { %v1762_v25 = vrot.slane %v1754_v20, %v5400_v23  ;;  %v1769_v28 = vrot.slane %v1755_v21, %v5400_v23  ;;  %v2023_v26 = vmul.f32 1.442695, %v2017_v22  ;;  %v2002_v33 = vmax.f32 %v5510_v24, -1e+30 }
 0x55c   : > { %v1824_v42 = vcombine.low %v1746_v30, %v1753_v31  ;;  %v3808_v44 = vcombine.high %v1746_v30, %v1753_v31 }
 0x55d   : > { %v1840_v34 = vcombine.low %v1762_v25, %v1769_v28  ;;  %v3809_v27 = vcombine.high %v1762_v25, %v1769_v28  ;;  %4326 = vpow2.f32 %v2023_v26  ;;  %v2018_v37 = vsub.f32 %v1985_v52, %v2002_v33 }
 0x55e   : > { %v1637_v35 = vpop.permute.xlu0 %1636  ;;  %v1831_v62 = vrot.slane %v1824_v42, %v5395_v18  ;;  %v1839_v0 = vrot.slane %v3808_v44, %v5395_v18  ;;  %v4232_v44 = vld [vmem:[%s5268_s3 + $0x10] sm:$0xff]  }
 0x55f   : > { %v1657_v38 = vcombine.high %v1637_v35, %v4749_v6  ;;  %v4323_v39 = vpop.eup %4322  ;;  %v1664_v43 = vrot.slane %v1637_v35, %v5395_v18  ;;  %v2025_v45 = vmul.f32 1.442695, %v2018_v37  ;;  %v1847_v48 = vrot.slane %v1840_v34, %v5395_v18 }
 0x560   : > { %v2031_v46 = vsel %vm1986_vm3, %v4323_v39, 0.0  ;;  %v1855_v55 = vrot.slane %v3809_v27, %v5395_v18  ;;  %v1856_v12 = vcombine.low %v1831_v62, %v1839_v0 }
 0x561   : > { %v1671_v36 = vrot.slane %v1657_v38, %v5395_v18  ;;  %v4325_v47 = vpop.eup %4324  ;;  %v1672_v49 = vcombine.low %v1649_v40, %v1664_v43  ;;  %v1673_v50 = vcombine.high %v1649_v40, %v1664_v43  ;;  %2032 = vadd.xlane.f32.xlu1 %v2031_v46  ;;  %4328 = vpow2.f32 %v2025_v45  ;;  %v4230_v43 = vld [vmem:[%s5268_s3] sm:$0xff]   ;;  %v4233_v45 = vld [vmem:[%s5268_s3 + $0x18] sm:$0xff]   ;;  %v4235_v46 = vld [vmem:[%s5268_s3 + $0x28] sm:$0xff]  }
 0x562   : > { %v2034_v53 = vsel %vm1986_vm3, %v4325_v47, 0.0  ;;  %v1864_v13 = vcombine.low %v1847_v48, %v1855_v55  ;;  %v1863_v30 = vrot.slane %v1856_v12, %v5400_v23  ;;  %v2047_v40 = vpack.c.bf16 %v4325_v47, %v4323_v39  ;;  %4022 = vmatpush3.bf16.msra.mxu0 %v4230_v43  ;;  %v4231_v39 = vld [vmem:[%s5268_s3 + $0x8] sm:$0xff]   ;;  %v4236_v47 = vld [vmem:[%s5268_s3 + $0x30] sm:$0xff]  }
 0x563   : > { %v1688_v51 = vcombine.low %v1656_v41, %v1671_v36  ;;  %v1689_v52 = vcombine.high %v1656_v41, %v1671_v36  ;;  %v1680_v60 = vrot.slane %v1672_v49, %v5400_v23  ;;  %v1687_v61 = vrot.slane %v1673_v50, %v5400_v23  ;;  %2035 = vadd.xlane.f32.xlu0 %v2034_v53  ;;  %v4234_v36 = vld [vmem:[%s5268_s3 + $0x20] sm:$0xff]  }
 0x564   : > { %v1871_v25 = vrot.slane %v1864_v13, %v5400_v23  ;;  %4023 = vmatprep.subr.bf16.mxu0 %v4749_v6  ;;  %v2003_v48 = vsub.f32 -1e+30, %v1999_v2  ;;  %v2004_v55 = vsub.f32 -1e+30, %v2000_v7 }
 0x565   : > { %v1696_v5 = vrot.slane %v1688_v51, %v5400_v23  ;;  %v1703_v58 = vrot.slane %v1689_v52, %v5400_v23  ;;  %v1774_v4 = vcombine.low %v1680_v60, %v1687_v61  ;;  %v3806_v8 = vcombine.high %v1680_v60, %v1687_v61 }
 0x566   : > { %v1872_v27 = vcombine.low %v1863_v30, %v1871_v25  ;;  %v1873_v38 = vcombine.high %v1863_v30, %v1871_v25  ;;  %4024 = vmatpush3.bf16.msra.mxu0 %v4231_v39  ;;  %v2007_v49 = vmul.f32 1.442695, %v2003_v48  ;;  %v2009_v50 = vmul.f32 1.442695, %v2004_v55 }
 0x567   : > { %v1790_v63 = vcombine.low %v1696_v5, %v1703_v58  ;;  %v3807_v9 = vcombine.high %v1696_v5, %v1703_v58  ;;  %v4327_v14 = vpop.eup %4326  ;;  %v1781_v16 = vrot.slane %v1774_v4, %v5395_v18  ;;  %v1789_v11 = vrot.slane %v3806_v8, %v5395_v18  ;;  %4025 = vmatprep.subr.bf16.mxu0 %v4749_v6 }
 0x568   : > { %v2037_v20 = vsel %vm1986_vm3, %v4327_v14, 0.0  ;;  %4330 = vpow2.f32 %v2007_v49  ;;  %v2005_v51 = vsub.f32 -1e+30, %v2001_v15  ;;  %v2006_v52 = vsub.f32 -1e+30, %v2002_v33 }
 0x569   : > { %v1797_v17 = vrot.slane %v1790_v63, %v5395_v18  ;;  %v1805_v19 = vrot.slane %v3807_v9, %v5395_v18  ;;  %v1806_v21 = vcombine.low %v1781_v16, %v1789_v11  ;;  %2038 = vadd.xlane.f32.xlu0 %v2037_v20  ;;  %4332 = vpow2.f32 %v2009_v50 }
 0x56a   : > { %4026 = vmatpush3.bf16.msra.mxu0 %v4232_v44  ;;  %v2011_v53 = vmul.f32 1.442695, %v2005_v51  ;;  %v2013_v60 = vmul.f32 1.442695, %v2006_v52 }
 0x56b   : > { %v1814_v22 = vcombine.low %v1797_v17, %v1805_v19  ;;  %v4329_v28 = vpop.eup %4328  ;;  %v1813_v26 = vrot.slane %v1806_v21, %v5400_v23  ;;  %4027 = vmatprep.subr.bf16.mxu0 %v4749_v6 }
 0x56c   : > { %v2040_v31 = vsel %vm1986_vm3, %v4329_v28, 0.0  ;;  %v2048_v42 = vpack.c.bf16 %v4329_v28, %v4327_v14  ;;  %4334 = vpow2.f32 %v2011_v53 }
 0x56d   : > { %v1821_v29 = vrot.slane %v1814_v22, %v5400_v23  ;;  %2041 = vadd.xlane.f32.xlu1 %v2040_v31  ;;  %4336 = vpow2.f32 %v2013_v60 }
 0x56e   : > { %4028 = vmatpush3.bf16.msra.mxu0 %v4233_v45 }
 0x56f   : > { %v1822_v34 = vcombine.low %v1813_v26, %v1821_v29  ;;  %v1823_v37 = vcombine.high %v1813_v26, %v1821_v29  ;;  %4029 = vmatprep.subr.bf16.mxu0 %v4749_v6 }
 0x571   : > { %v1874_v35 = vpack.c.bf16 %v1872_v27, %v1822_v34  ;;  %v1875_v41 = vpack.c.bf16 %v1873_v38, %v1823_v37 }
 0x572   : > { %4030 = vmatpush3.bf16.msra.mxu0 %v4234_v36  ;;  %v4331_v61 = vpop.eup %4330 }
 0x573   : > { %4010 = vmatpush3.bf16.msra.mxu1 %v1874_v35  ;;  %4031 = vmatprep.subr.bf16.mxu0 %v4749_v6  ;;  %v4333_v1 = vpop.eup %4332  ;;  %v2027_v62 = vmul.f32 0.0, %v4331_v61 }
 0x574   : > { %4015 = vmatprep.subr.bf16.mxu1 %v4749_v6  ;;  %v2028_v0 = vmul.f32 0.0, %v4333_v1 }
 0x576   : > { %4012 = vmatmul.mubr.msk.bf16.vlgmr.msra.gmra.mrb[12].mxu1 %vm1986_vm3, %v2047_v40  ;;  %4032 = vmatpush3.bf16.msra.mxu0 %v4235_v46  ;;  %v4335_v58 = vpop.eup %4334 }
 0x577   : > { %4016 = vmatpush3.bf16.msra.mxu1 %v1875_v41  ;;  %4017 = vmatprep.mubr.msk.bf16.mxu1 %vm4751_vm0, %v4749_v6  ;;  %v4337_v10 = vpop.eup %4336  ;;  %v2029_v4 = vmul.f32 0.0, %v4335_v58 }
 0x578   : > { %4033 = vmatprep.subr.bf16.mxu0 %v4749_v6  ;;  %v2030_v8 = vmul.f32 0.0, %v4337_v10 }
 0x57a   : > { %4034 = vmatpush3.bf16.msra.mxu0 %v4236_v47 }
 0x57b   : > { %4035 = vmatprep.subr.bf16.mxu0 %v4749_v6 }
 0x57e   : > { %4018 = vmatmul.mubr.msk.bf16.vlgmr.msra.gmra.mrb[16].mxu1 %vm1986_vm3, %v2048_v42 }
 0x57f   : > { %2793 = vmatprep.mubr.bf16.mxu1 %v4750_v32 }
 0x5ee   : > { %v2033_v2 = vpop.xlane.xlu1 %2032 }
 0x5ef   : > { %v2043_v7 = vadd.f32 %v2033_v2, %v2027_v62 }
 0x5f0   : > { %v2036_v3 = vpop.xlane.xlu0 %2035 }
 0x5f1   : > { %v2044_v5 = vadd.f32 %v2036_v3, %v2028_v0  ;;  %4338 = vrcp.f32 %v2043_v7 }
 0x5f3   : > { %4340 = vrcp.f32 %v2044_v5 }
 0x5f6   : > { %v2039_v15 = vpop.xlane.xlu0 %2038 }
 0x5f7   : > { %v2045_v33 = vadd.f32 %v2039_v15, %v2029_v4 }
 0x5f9   : > { %4342 = vrcp.f32 %v2045_v33 }
 0x5fa   : > { %v2042_v24 = vpop.xlane.xlu1 %2041 }
 0x5fb   : > { %v2046_v63 = vadd.f32 %v2042_v24, %v2030_v8  ;;  %v4339_v16 = vpop.eup %4338 }
 0x5fd   : > { %4344 = vrcp.f32 %v2046_v63  ;;  %v4341_v20 = vpop.eup %4340 }
 0x603   : > { %v4343_v26 = vpop.eup %4342 }
 0x607   : > { %v4345_v35 = vpop.eup %4344 }
 0x649   : > { %v2086_v9 = vpop.f32.mrb[12].mxu1 }
 0x64a   : > { %v2137_v13 = vadd.f32 %v2086_v9, %v2027_v62  ;;  %v4013_v14 = vpop.f32.mrb[13].mxu1 }
 0x64b   : > { %v2089_v11 = vpop.f32.mrb[14].mxu1 }
 0x64c   : > { %v2145_v12 = vmul.f32 %v4339_v16, %v2137_v13  ;;  %v2138_v17 = vadd.f32 %v2089_v11, %v2028_v0  ;;  %v4014_v19 = vpop.f32.mrb[15].mxu1 }
 0x64d   : > { %v4237_v19 = vld [vmem:[%s5268_s3 + $0x38] sm:$0xff]  }
 0x64e   : > { %v2146_v21 = vmul.f32 %v4341_v20, %v2138_v17  ;;  %v2149_v29 = vcombine.high %v2145_v12, %v4749_v6  ;;  %v2156_v37 = vrot.slane %v2145_v12, %v5395_v18  ;;  %4036 = vmatpush3.bf16.msra.mxu0 %v4237_v19  ;;  %v4273_v19 = vld [vmem:[%s5270_s9 + $0xac] ss:$16 sps:$4 sm:$0xff]  }
 0x650   : > { %v2163_v42 = vrot.slane %v2149_v29, %v5395_v18  ;;  %v2215_v43 = vcombine.high %v2146_v21, %v4749_v6  ;;  %v2222_v46 = vrot.slane %v2146_v21, %v5395_v18 }
 0x651   : > { %v2130_v22 = vpop.f32.mrb[16].mxu1 }
 0x652   : > { %v2139_v25 = vadd.f32 %v2130_v22, %v2029_v4  ;;  %v4019_v28 = vpop.f32.mrb[17].mxu1  ;;  %v2229_v51 = vrot.slane %v2215_v43, %v5395_v18 }
 0x653   : > { %v2133_v30 = vpop.f32.mrb[18].mxu1 }
 0x654   : > { %v2147_v31 = vmul.f32 %v4343_v26, %v2139_v25  ;;  %v2140_v34 = vadd.f32 %v2133_v30, %v2030_v8  ;;  %v4020_v27 = vpop.f32.mrb[19].mxu1 }
 0x656   : > { %v2164_v38 = vcombine.high %v2147_v31, %v4749_v6  ;;  %v2171_v40 = vrot.slane %v2147_v31, %v5395_v18  ;;  %v2148_v41 = vmul.f32 %v4345_v35, %v2140_v34 }
 0x658   : > { %v2178_v39 = vrot.slane %v2164_v38, %v5395_v18  ;;  %v2179_v44 = vcombine.low %v2156_v37, %v2171_v40  ;;  %v2180_v45 = vcombine.high %v2156_v37, %v2171_v40  ;;  %v2230_v36 = vcombine.high %v2148_v41, %v4749_v6 }
 0x659   : > { %v2237_v47 = vrot.slane %v2148_v41, %v5395_v18 }
 0x65a   : > { %v2187_v48 = vrot.slane %v2179_v44, %v5400_v23  ;;  %v2194_v55 = vrot.slane %v2180_v45, %v5400_v23  ;;  %v2195_v49 = vcombine.low %v2163_v42, %v2178_v39  ;;  %v2196_v50 = vcombine.high %v2163_v42, %v2178_v39 }
 0x65b   : > { %v2244_v52 = vrot.slane %v2230_v36, %v5395_v18  ;;  %v2245_v53 = vcombine.low %v2222_v46, %v2237_v47  ;;  %v2246_v60 = vcombine.high %v2222_v46, %v2237_v47  ;;  %v4382_v46 = vld [vmem:[#allocation2] sm:$0xff] }
 0x65c   : > { %v2203_v61 = vrot.slane %v2195_v49, %v5400_v23  ;;  %v2210_v6 = vrot.slane %v2196_v50, %v5400_v23  ;;  %v2281_v1 = vcombine.low %v2187_v48, %v2194_v55  ;;  %v3814_v2 = vcombine.high %v2187_v48, %v2194_v55  ;;  %v4238_v50 = vld [vmem:[%s5270_s9] ss:$16 sps:$4 sm:$0xff]  }
 0x65d   : > { %v2253_v62 = vrot.slane %v2245_v53, %v5400_v23  ;;  %v2260_v3 = vrot.slane %v2246_v60, %v5400_v23  ;;  %v2261_v7 = vcombine.low %v2229_v51, %v2244_v52  ;;  %v2262_v0 = vcombine.high %v2229_v51, %v2244_v52  ;;  %v4240_v51 = vld [vmem:[%s5270_s9 + $0x4] ss:$16 sps:$4 sm:$0xff]   ;;  %v4241_v52 = vld [vmem:[%s5270_s9 + $0x8] ss:$16 sps:$4 sm:$0xff]   ;;  %v4243_v53 = vld [vmem:[%s5270_s9 + $0xc] ss:$16 sps:$4 sm:$0xff]  }
 0x65e   : > { %v2297_v5 = vcombine.low %v2203_v61, %v2210_v6  ;;  %v3815_v58 = vcombine.high %v2203_v61, %v2210_v6  ;;  %v2288_v10 = vrot.slane %v2281_v1, %v5395_v18  ;;  %v2296_v15 = vrot.slane %v3814_v2, %v5395_v18  ;;  %v4246_v60 = vld [vmem:[%s5270_s9 + $0x24] ss:$16 sps:$4 sm:$0xff]   ;;  %2761 = vmatprep.subr.bf16.mxu1 %v4240_v51  ;;  %v4249_v61 = vld [vmem:[%s5270_s9 + $0x2c] ss:$16 sps:$4 sm:$0xff]   ;;  %v4244_v6 = vld [vmem:[%s5270_s9 + $0x20] ss:$16 sps:$4 sm:$0xff]  }
 0x65f   : > { %v2269_v4 = vrot.slane %v2261_v7, %v5400_v23  ;;  %v2276_v24 = vrot.slane %v2262_v0, %v5400_v23  ;;  %v2331_v33 = vcombine.low %v2253_v62, %v2260_v3  ;;  %v3816_v8 = vcombine.high %v2253_v62, %v2260_v3  ;;  %2804 = vmatprep.subr.bf16.mxu0 %v4243_v53  ;;  %v4247_v1 = vld [vmem:[%s5270_s9 + $0x28] ss:$16 sps:$4 sm:$0xff]   ;;  %v4288_v51 = vld [vmem:[%s5308_s19] sm:$0xff]  }
 0x660   : > { %v2304_v63 = vrot.slane %v2297_v5, %v5395_v18  ;;  %v2312_v9 = vrot.slane %v3815_v58, %v5395_v18  ;;  %v2313_v13 = vcombine.low %v2288_v10, %v2296_v15  ;;  %2762 = vmatpush1.bf16.msra.mxu1 %v4238_v50  ;;  %v4252_v15 = vld [vmem:[%s5270_s9 + $0x44] ss:$16 sps:$4 sm:$0xff]   ;;  %v4290_v53 = vld [vmem:[%s5308_s19 + $0x48] sm:$0xff]  }
 0x661   : > { %v2347_v14 = vcombine.low %v2269_v4, %v2276_v24  ;;  %v3817_v16 = vcombine.high %v2269_v4, %v2276_v24  ;;  %v2338_v11 = vrot.slane %v2331_v33, %v5395_v18  ;;  %v2346_v12 = vrot.slane %v3816_v8, %v5395_v18  ;;  %2763 = vmatprep.subr.bf16.mxu1 %v4246_v60  ;;  %v4255_v4 = vld [vmem:[%s5270_s9 + $0x4c] ss:$16 sps:$4 sm:$0xff]   ;;  %v4250_v24 = vld [vmem:[%s5270_s9 + $0x40] ss:$16 sps:$4 sm:$0xff]   ;;  %v4253_v33 = vld [vmem:[%s5270_s9 + $0x48] ss:$16 sps:$4 sm:$0xff]  }
 0x662   : > { %v2321_v17 = vcombine.low %v2304_v63, %v2312_v9  ;;  %v2320_v25 = vrot.slane %v2313_v13, %v5400_v23  ;;  %v4258_v8 = vld [vmem:[%s5270_s9 + $0x64] ss:$16 sps:$4 sm:$0xff]   ;;  %v4261_v63 = vld [vmem:[%s5270_s9 + $0x6c] ss:$16 sps:$4 sm:$0xff]   ;;  %v4256_v9 = vld [vmem:[%s5270_s9 + $0x60] ss:$16 sps:$4 sm:$0xff]  }
 0x663   : > { %v2354_v20 = vrot.slane %v2347_v14, %v5395_v18  ;;  %v2362_v21 = vrot.slane %v3817_v16, %v5395_v18  ;;  %v2363_v22 = vcombine.low %v2338_v11, %v2346_v12  ;;  %v4259_v13 = vld [vmem:[%s5270_s9 + $0x68] ss:$16 sps:$4 sm:$0xff]   ;;  %v4264_v14 = vld [vmem:[%s5270_s9 + $0x84] ss:$16 sps:$4 sm:$0xff]   ;;  %v4267_v16 = vld [vmem:[%s5270_s9 + $0x8c] ss:$16 sps:$4 sm:$0xff]  }
 0x664   : > { %v2328_v28 = vrot.slane %v2321_v17, %v5400_v23  ;;  %2764 = vmatpush1.bf16.msra.mxu1 %v4244_v6  ;;  %v4262_v11 = vld [vmem:[%s5270_s9 + $0x80] ss:$16 sps:$4 sm:$0xff]   ;;  %v4265_v12 = vld [vmem:[%s5270_s9 + $0x88] ss:$16 sps:$4 sm:$0xff]   ;;  %v4270_v17 = vld [vmem:[%s5270_s9 + $0xa4] ss:$16 sps:$4 sm:$0xff]  }
 0x665   : > { %v2371_v26 = vcombine.low %v2354_v20, %v2362_v21  ;;  %v2370_v31 = vrot.slane %v2363_v22, %v5400_v23  ;;  %2765 = vmatprep.subr.bf16.mxu1 %v4252_v15  ;;  %v4268_v20 = vld [vmem:[%s5270_s9 + $0xa0] ss:$16 sps:$4 sm:$0xff]   ;;  %v4271_v21 = vld [vmem:[%s5270_s9 + $0xa8] ss:$16 sps:$4 sm:$0xff]  }
 0x666   : > { %v2330_v29 = vcombine.high %v2320_v25, %v2328_v28  ;;  %v2329_v30 = vcombine.low %v2320_v25, %v2328_v28  ;;  %v4274_v22 = vld [vmem:[%s5270_s9 + $0xc0] ss:$16 sps:$4 sm:$0xff]   ;;  %v4276_v25 = vld [vmem:[%s5270_s9 + $0xc4] ss:$16 sps:$4 sm:$0xff]   ;;  %v4277_v28 = vld [vmem:[%s5270_s9 + $0xc8] ss:$16 sps:$4 sm:$0xff]  }
 0x667   : > { %v2378_v34 = vrot.slane %v2371_v26, %v5400_v23  ;;  %v3818_v23 = vld [vmem:[%s820_s13] ss:$0 sm:$0xff]  ;;  %v4287_v50 = vld [vmem:[%s5308_s19 + $0xc0] sm:$0xff]  }
 0x668   : > { %2766 = vmatpush1.bf16.msra.mxu1 %v4250_v24  ;;  %v4279_v26 = vld [vmem:[%s5270_s9 + $0xcc] ss:$16 sps:$4 sm:$0xff]   ;;  %v4303_v15 = vld [vmem:[%s5308_s19 + $0xe0] sm:$0xff]  }
 0x669   : > { %v2380_v27 = vcombine.high %v2370_v31, %v2378_v34  ;;  %v2379_v35 = vcombine.low %v2370_v31, %v2378_v34  ;;  %2767 = vmatprep.subr.bf16.mxu1 %v4258_v8  ;;  %v4280_v31 = vld [vmem:[%s5270_s9 + $0xe0] ss:$16 sps:$4 sm:$0xff]   ;;  %v4283_v34 = vld [vmem:[%s5270_s9 + $0xe8] ss:$16 sps:$4 sm:$0xff]  }
 0x66a   : > { %v4291_v60 = vld [vmem:[%s5308_s19 + $0xc8] sm:$0xff]   ;;  %v4305_v24 = vld [vmem:[%s5308_s19 + $0xa0] sm:$0xff]  }
 0x66b   : > { %v4193_v37 = vpack.i.bf16 %v2380_v27, %v2330_v29  ;;  %v4282_v29 = vld [vmem:[%s5270_s9 + $0xe4] ss:$16 sps:$4 sm:$0xff]   ;;  %v4293_v6 = vld [vmem:[%s5308_s19 + $0x88] sm:$0xff]  }
 0x66c   : > { %2768 = vmatpush1.bf16.msra.mxu1 %v4256_v9  ;;  %v4307_v8 = vld [vmem:[%s5308_s19 + $0xe8] sm:$0xff]  }
 0x66d   : > { %4194 = vrot.lane.b32.xlu0 %v4193_v37, %s4752_s11  ;;  %2769 = vmatprep.subr.bf16.mxu1 %v4264_v14  ;;  %v4309_v9 = vld [vmem:[%s5308_s19 + $0xa8] sm:$0xff]   ;;  %v4311_v14 = vld [vmem:[%s5308_s19 + $0xf0] sm:$0xff]  }
 0x670   : > { %2770 = vmatpush1.bf16.msra.mxu1 %v4262_v11  ;;  %v4313_v11 = vld [vmem:[%s5308_s19 + $0xb0] sm:$0xff]  }
 0x671   : > { %2771 = vmatprep.subr.bf16.mxu1 %v4270_v17  ;;  %v4315_v17 = vld [vmem:[%s5308_s19 + $0xf8] sm:$0xff]  }
 0x674   : > { %2772 = vmatpush1.bf16.msra.mxu1 %v4268_v20  ;;  %v4317_v20 = vld [vmem:[%s5308_s19 + $0xb8] sm:$0xff]  }
 0x675   : > { %2773 = vmatprep.subr.bf16.mxu1 %v4276_v25 }
 0x678   : > { %2774 = vmatpush1.bf16.msra.mxu1 %v4274_v22  ;;  %v2595_v22 = vsub.s32 3, %v5373_v56 }
 0x679   : > { %2775 = vmatprep.subr.bf16.mxu1 %v4282_v29 }
 0x67c   : > { %2776 = vmatpush1.bf16.msra.mxu1 %v4280_v31 }
 0x6df   : > { %v4195_v18 = vpop.permute.xlu0 %4194 }
 0x6e0   : > { %v4197_v38 = vunpack.i.h.bf16 %v4195_v18  ;;  %v4196_v40 = vunpack.i.l.bf16 %v4195_v18 }
 0x6e2   : > { %v2389_v41 = vsel %vm1876_vm1, %v2329_v30, %v4196_v40  ;;  %v2390_v42 = vsel %vm1876_vm1, %v2379_v35, %v4197_v38  ;;  %v4285_v30 = vld [vmem:[%s5270_s9 + $0xec] ss:$16 sps:$4 sm:$0xff]   ;;  %s6058_s9 = sld [smem:[#allocation26_spill]] }
 0x6e3   : > { %v2391_v43 = vpack.c.bf16 %v2390_v42, %v2389_v41 }
 0x6e5   : > { %4038 = vmatmul.mubr.bf16.vlgmr.msra.gmra.mrb[4].mxu0 %v2391_v43  ;;  %v3827_v43 = vld [vmem:[%s823_s5] ss:$0 sm:$0xff] }
 0x6e6   : > { %2836 = vmatprep.mubr.bf16.mxu0 %v4750_v32  ;;  %v4383_v32 = vld [vmem:[#allocation2 + $0x8] sm:$0xff]  ;;  %2805 = vmatpush1.bf16.msra.mxu0 %v4241_v52  ;;  %v4289_v52 = vld [vmem:[%s5308_s19 + $0x80] sm:$0xff]  }
 0x6e7   : > { %2806 = vmatprep.subr.bf16.mxu0 %v4249_v61  ;;  %v4292_v61 = vld [vmem:[%s5308_s19 + $0x8] sm:$0xff]  }
 0x6e8   : > { %p3894_p7 = scmp.ne.s32.totalorder %s6058_s9, 1 }
 0x6e9   : > { %s6059_s21 = sld [smem:[#allocation52_spill]] (!%p3894_p7)  ;;  %s6060_s29 = sld [smem:[#allocation53_spill]] (!%p3894_p7) }
 0x6ea   : > { %2807 = vmatpush1.bf16.msra.mxu0 %v4247_v1  ;;  %v4294_v1 = vld [vmem:[%s5308_s19 + $0x50] sm:$0xff]  }
 0x6eb   : > { %2808 = vmatprep.subr.bf16.mxu0 %v4255_v4  ;;  %v4304_v4 = vld [vmem:[%s5308_s19 + $0x20] sm:$0xff]  }
 0x6ee   : > { %2809 = vmatpush1.bf16.msra.mxu0 %v4253_v33  ;;  %v4306_v33 = vld [vmem:[%s5308_s19 + $0x68] sm:$0xff]  }
 0x6ef   : > { %2810 = vmatprep.subr.bf16.mxu0 %v4261_v63  ;;  %v4308_v63 = vld [vmem:[%s5308_s19 + $0x28] sm:$0xff]  }
 0x6f2   : > { %2811 = vmatpush1.bf16.msra.mxu0 %v4259_v13  ;;  %v4310_v13 = vld [vmem:[%s5308_s19 + $0x70] sm:$0xff]  }
 0x6f3   : > { %2812 = vmatprep.subr.bf16.mxu0 %v4267_v16  ;;  %v4312_v16 = vld [vmem:[%s5308_s19 + $0x30] sm:$0xff]  }
 0x6f6   : > { %2813 = vmatpush1.bf16.msra.mxu0 %v4265_v12  ;;  %v4314_v12 = vld [vmem:[%s5308_s19 + $0x78] sm:$0xff]  }
 0x6f7   : > { %2814 = vmatprep.subr.bf16.mxu0 %v4273_v19  ;;  %v4316_v19 = vld [vmem:[%s5308_s19 + $0x38] sm:$0xff]  }
 0x6fa   : > { %2815 = vmatpush1.bf16.msra.mxu0 %v4271_v21  ;;  %v2579_v21 = vld [vmem:[%s5302_s18] sm:$0xf] }
 0x6fb   : > { %2816 = vmatprep.subr.bf16.mxu0 %v4279_v26  ;;  %v2584_v25 = vrot.slane %v2579_v21, %v923_v59  ;;  %v2588_v26 = vrot.slane %v2579_v21, %v927_v57  ;;  %v2596_v29 = vrot.slane %v2579_v21, %v2595_v22 }
 0x6fe   : > { %2817 = vmatpush1.bf16.msra.mxu0 %v4277_v28  ;;  %v2592_v28 = vrot.slane %v2579_v21, %v931_v54 }
 0x6ff   : > { %2818 = vmatprep.subr.bf16.mxu0 %v4285_v30 }
 0x702   : > { %2819 = vmatpush1.bf16.msra.mxu0 %v4283_v34 }
 0x703   : > { %3955 = vmatprep.subr.bf16.mxu0 %v4287_v50 }
 0x7b8   : > { %v2497_v39 = vpop.f32.mrb[4].mxu0 }
 0x7b9   : > { %v2498_v44 = vadd.f32 %v3818_v23, %v2497_v39  ;;  %v4039_v45 = vpop.f32.mrb[5].mxu0 }
 0x7ba   : > { %v2500_v36 = vpop.f32.mrb[6].mxu0  ;;  %v3828_v45 = vld [vmem:[%s826_s16] ss:$0 sm:$0xff] }
 0x7bb   : > { %v5615_v47 = vadd.f32 %v4382_v46, %v2498_v44  ;;  %v2501_v48 = vadd.f32 %v3818_v23, %v2500_v36  ;;  %v4040_v55 = vpop.f32.mrb[7].mxu0 }
 0x7bd   : > { %2508 = vadd.xlane.f32.xlu1 %v5615_v47  ;;  %v5618_v49 = vadd.f32 %v4383_v32, %v2501_v48  ;;  %v4286_v32 = vld [vmem:[%s5308_s19 + $0x40] sm:$0xff]  }
 0x7be   : > { %3933 = vmatprep.subr.bf16.mxu1 %v4286_v32 }
 0x7c1   : > { %2510 = vadd.xlane.f32.xlu1 %v5618_v49 }
 0x84a   : > { %v2509_v2 = vpop.xlane.xlu1 %2508 }
 0x84b   : > { %v2512_v62 = vmul.f32 0.0078125, %v2509_v2  ;;  %v4295_v2 = vld [vmem:[%s5308_s19 + $0xd0] sm:$0xff]  }
 0x84d   : > { %v5630_v3 = vsub.f32 %v5615_v47, %v2512_v62  ;;  %v4296_v62 = vld [vmem:[%s5308_s19 + $0x10] sm:$0xff]  }
 0x84e   : > { %v2511_v7 = vpop.xlane.xlu1 %2510 }
 0x84f   : > { %v2513_v0 = vmul.f32 0.0078125, %v2511_v7  ;;  %v2516_v5 = vmul.f32 %v5630_v3, %v5630_v3  ;;  %v4298_v7 = vld [vmem:[%s5308_s19 + $0x58] sm:$0xff]  }
 0x851   : > { %v5635_v58 = vsub.f32 %v5618_v49, %v2513_v0  ;;  %2518 = vadd.xlane.f32.xlu1 %v2516_v5  ;;  %v4299_v0 = vld [vmem:[%s5308_s19 + $0xd8] sm:$0xff]  }
 0x852   : > { %v4300_v5 = vld [vmem:[%s5308_s19 + $0x18] sm:$0xff]  }
 0x853   : > { %v2517_v10 = vmul.f32 %v5635_v58, %v5635_v58 }
 0x855   : > { %2520 = vadd.xlane.f32.xlu1 %v2517_v10  ;;  %v4302_v10 = vld [vmem:[%s5308_s19 + $0x60] sm:$0xff]  }
 0x8de   : > { %v2519_v27 = vpop.xlane.xlu1 %2518 }
 0x8df   : > { %v2522_v35 = vmul.f32 0.0078125, %v2519_v27 }
 0x8e1   : > { %v2524_v37 = vadd.f32 1e-05, %v2522_v35 }
 0x8e2   : > { %v2521_v18 = vpop.xlane.xlu1 %2520 }
 0x8e3   : > { %4346 = vrsqrt.f32 %v2524_v37  ;;  %v2523_v38 = vmul.f32 0.0078125, %v2521_v18 }
 0x8e5   : > { %v2525_v40 = vadd.f32 1e-05, %v2523_v38 }
 0x8e7   : > { %4348 = vrsqrt.f32 %v2525_v40 }
 0x8ed   : > { %v4347_v41 = vpop.eup %4346 }
 0x8ee   : > { %v2528_v42 = vmul.f32 %v4347_v41, %v5630_v3  ;;  %v4297_v3 = vld [vmem:[%s5308_s19 + $0x90] sm:$0xff]  }
 0x8f0   : > { %v2536_v44 = vmul.f32 %v3827_v43, %v2528_v42 }
 0x8f1   : > { %v4349_v23 = vpop.eup %4348 }
 0x8f2   : > { %v2529_v39 = vmul.f32 %v4349_v23, %v5635_v58  ;;  %v2544_v46 = vadd.f32 %v3828_v45, %v2536_v44  ;;  %v4301_v58 = vld [vmem:[%s5308_s19 + $0x98] sm:$0xff]  }
 0x8f4   : > { %v2537_v36 = vmul.f32 %v3827_v43, %v2529_v39 }
 0x8f6   : > { %v2545_v48 = vadd.f32 %v3828_v45, %v2537_v36 }
 0x8f8   : > { %v2546_v55 = vpack.c.bf16 %v2545_v48, %v2544_v46 }
 0x8fa   : > { %2794 = vmatmul.mubr.bf16.vlgmr.msra.gmra.mrb[20].mxu1 %v2546_v55  ;;  %2837 = vmatmul.mubr.bf16.vlgmr.msra.gmra.mrb[8].mxu0 %v2546_v55 }
 0x8fb   : > { %3934 = vmatpush3.bf16.msra.mxu1 %v4288_v51  ;;  %3956 = vmatpush3.bf16.msra.mxu0 %v4289_v52 }
 0x8fc   : > { %3935 = vmatprep.subr.bf16.mxu1 %v4290_v53  ;;  %3957 = vmatprep.subr.bf16.mxu0 %v4291_v60 }
 0x8ff   : > { %3936 = vmatpush3.bf16.msra.mxu1 %v4292_v61  ;;  %3958 = vmatpush3.bf16.msra.mxu0 %v4293_v6 }
 0x900   : > { %3937 = vmatprep.subr.bf16.mxu1 %v4294_v1  ;;  %3959 = vmatprep.subr.bf16.mxu0 %v4295_v2 }
 0x903   : > { %3938 = vmatpush3.bf16.msra.mxu1 %v4296_v62  ;;  %3960 = vmatpush3.bf16.msra.mxu0 %v4297_v3 }
 0x904   : > { %3939 = vmatprep.subr.bf16.mxu1 %v4298_v7  ;;  %3961 = vmatprep.subr.bf16.mxu0 %v4299_v0 }
 0x907   : > { %3940 = vmatpush3.bf16.msra.mxu1 %v4300_v5  ;;  %3962 = vmatpush3.bf16.msra.mxu0 %v4301_v58 }
 0x908   : > { %3941 = vmatprep.subr.bf16.mxu1 %v4302_v10  ;;  %3963 = vmatprep.subr.bf16.mxu0 %v4303_v15 }
 0x90b   : > { %3942 = vmatpush3.bf16.msra.mxu1 %v4304_v4  ;;  %3964 = vmatpush3.bf16.msra.mxu0 %v4305_v24 }
 0x90c   : > { %3943 = vmatprep.subr.bf16.mxu1 %v4306_v33  ;;  %3965 = vmatprep.subr.bf16.mxu0 %v4307_v8 }
 0x90f   : > { %3944 = vmatpush3.bf16.msra.mxu1 %v4308_v63  ;;  %3966 = vmatpush3.bf16.msra.mxu0 %v4309_v9 }
 0x910   : > { %3945 = vmatprep.subr.bf16.mxu1 %v4310_v13  ;;  %3967 = vmatprep.subr.bf16.mxu0 %v4311_v14 }
 0x913   : > { %3946 = vmatpush3.bf16.msra.mxu1 %v4312_v16  ;;  %3968 = vmatpush3.bf16.msra.mxu0 %v4313_v11 }
 0x914   : > { %3947 = vmatprep.subr.bf16.mxu1 %v4314_v12  ;;  %3969 = vmatprep.subr.bf16.mxu0 %v4315_v17 }
 0x917   : > { %3948 = vmatpush3.bf16.msra.mxu1 %v4316_v19  ;;  %3970 = vmatpush3.bf16.msra.mxu0 %v4317_v20 }
 0x9cd   : > { %v2795_v30 = vpop.f32.mrb[20].mxu1  ;;  %v2838_v31 = vpop.f32.mrb[8].mxu0 }
 0x9ce   : > { %v5715_v34 = vadd.f32 %v2795_v30, %v2584_v25  ;;  %v5717_v27 = vadd.f32 %v2838_v31, %v2592_v28  ;;  %v2797_v35 = vpop.f32.mrb[21].mxu1  ;;  %v2840_v37 = vpop.f32.mrb[9].mxu0 }
 0x9cf   : > { %v5719_v18 = vadd.f32 %v2797_v35, %v2588_v26  ;;  %v5721_v38 = vadd.f32 %v2840_v37, %v2596_v29  ;;  %v2799_v59 = vpop.f32.mrb[22].mxu1  ;;  %v2842_v40 = vpop.f32.mrb[10].mxu0 }
 0x9d0   : > { %v5724_v54 = vmul.f32 0.70710677, %v5715_v34  ;;  %v5727_v56 = vmul.f32 0.70710677, %v5717_v27  ;;  %v2801_v32 = vpop.f32.mrb[23].mxu1  ;;  %v2844_v50 = vpop.f32.mrb[11].mxu0  ;;  %v5739_v52 = vadd.f32 %v2799_v59, %v2584_v25  ;;  %v5741_v53 = vadd.f32 %v2842_v40, %v2592_v28 }
 0x9d1   : > { %v5730_v57 = vmul.f32 0.70710677, %v5719_v18  ;;  %v5733_v41 = vmul.f32 0.70710677, %v5721_v38  ;;  %v5746_v6 = vadd.f32 %v2801_v32, %v2588_v26  ;;  %v5752_v3 = vadd.f32 %v2844_v50, %v2596_v29 }
 0x9d2   : > { %v2863_v42 = vand.u32 2147483647, %v5724_v54  ;;  %v2865_v43 = vand.u32 2147483647, %v5727_v56  ;;  %v5744_v61 = vmul.f32 0.70710677, %v5739_v52 }
 0x9d3   : > { %v2864_v23 = vand.u32 2147483647, %v5730_v57  ;;  %v2866_v39 = vand.u32 2147483647, %v5733_v41  ;;  %v5749_v2 = vmul.f32 0.70710677, %v5741_v53 }
 0x9d4   : > { %v2871_v44 = vmul.f32 0.3275911, %v2863_v42  ;;  %v2873_v45 = vmul.f32 0.3275911, %v2865_v43  ;;  %v2975_v1 = vsub.f32 0.0, %v2863_v42  ;;  %v2977_v7 = vsub.f32 0.0, %v2865_v43 }
 0x9d5   : > { %v2872_v36 = vmul.f32 0.3275911, %v2864_v23  ;;  %v2874_v55 = vmul.f32 0.3275911, %v2866_v39  ;;  %v2867_v62 = vand.u32 2147483647, %v5744_v61 }
 0x9d6   : > { %v2879_v46 = vadd.f32 1.0, %v2871_v44  ;;  %v2881_v48 = vadd.f32 1.0, %v2873_v45  ;;  %v2976_v0 = vsub.f32 0.0, %v2864_v23  ;;  %v2869_v5 = vand.u32 2147483647, %v5749_v2 }
 0x9d7   : > { %v2880_v51 = vadd.f32 1.0, %v2872_v36  ;;  %v2882_v60 = vadd.f32 1.0, %v2874_v55  ;;  %v5756_v58 = vmul.f32 0.70710677, %v5746_v6  ;;  %v2978_v10 = vsub.f32 0.0, %v2866_v39 }
 0x9d8   : > { %4350 = vrcp.f32 %v2879_v46  ;;  %v2875_v15 = vmul.f32 0.3275911, %v2867_v62  ;;  %v2983_v4 = vmul.f32 %v2975_v1, %v2863_v42  ;;  %v2877_v24 = vmul.f32 0.3275911, %v2869_v5 }
 0x9d9   : > { %4352 = vrcp.f32 %v2881_v48  ;;  %v2868_v33 = vand.u32 2147483647, %v5756_v58  ;;  %v5760_v63 = vmul.f32 0.70710677, %v5752_v3  ;;  %v2985_v9 = vmul.f32 %v2977_v7, %v2865_v43 }
 0x9da   : > { %4354 = vrcp.f32 %v2880_v51  ;;  %v2883_v8 = vadd.f32 1.0, %v2875_v15  ;;  %v2984_v13 = vmul.f32 %v2976_v0, %v2864_v23  ;;  %v2885_v14 = vadd.f32 1.0, %v2877_v24 }
 0x9db   : > { %4356 = vrcp.f32 %v2882_v60  ;;  %v2876_v16 = vmul.f32 0.3275911, %v2868_v33  ;;  %v2986_v12 = vmul.f32 %v2978_v10, %v2866_v39  ;;  %v2979_v17 = vsub.f32 0.0, %v2867_v62 }
 0x9dc   : > { %4358 = vrcp.f32 %v2883_v8  ;;  %v5765_v19 = vand.u32 2147483647, %v5760_v63  ;;  %v2991_v22 = vmul.f32 1.442695, %v2983_v4  ;;  %v2981_v26 = vsub.f32 0.0, %v2869_v5 }
 0x9dd   : > { %4360 = vrcp.f32 %v2885_v14  ;;  %v2884_v25 = vadd.f32 1.0, %v2876_v16  ;;  %v2995_v31 = vmul.f32 1.442695, %v2985_v9  ;;  %v2987_v59 = vmul.f32 %v2979_v17, %v2867_v62 }
 0x9de   : > { %v2878_v29 = vmul.f32 0.3275911, %v5765_v19  ;;  %v2993_v23 = vmul.f32 1.442695, %v2984_v13  ;;  %v2997_v39 = vmul.f32 1.442695, %v2986_v12  ;;  %v2989_v36 = vmul.f32 %v2981_v26, %v2869_v5 }
 0x9df   : > { %4362 = vrcp.f32 %v2884_v25  ;;  %v2980_v46 = vsub.f32 0.0, %v2868_v33  ;;  %v2999_v51 = vmul.f32 1.442695, %v2987_v59  ;;  %v2982_v16 = vsub.f32 0.0, %v5765_v19 }
 0x9e0   : > { %v2886_v40 = vadd.f32 1.0, %v2878_v29  ;;  %4364 = vpow2.f32 %v2991_v22  ;;  %v3003_v5 = vmul.f32 1.442695, %v2989_v36  ;;  %vm3023_vm5 = vcmp.ge.f32.partialorder %v5724_v54, 0.0 }
 0x9e1   : > { %v2988_v10 = vmul.f32 %v2980_v46, %v2868_v33  ;;  %vm3025_vm6 = vcmp.ge.f32.partialorder %v5727_v56, 0.0  ;;  %vm3024_vm7 = vcmp.ge.f32.partialorder %v5730_v57, 0.0  ;;  %vm3027_vm8 = vcmp.ge.f32.partialorder %v5744_v61, 0.0 }
 0x9e2   : > { %v5762_v11 = vpop.eup %4350  ;;  %4366 = vrcp.f32 %v2886_v40  ;;  %vm3029_vm9 = vcmp.ge.f32.partialorder %v5749_v2, 0.0  ;;  %vm3028_vm10 = vcmp.ge.f32.partialorder %v5756_v58, 0.0  ;;  %vm3026_vm11 = vcmp.ge.f32.partialorder %v5733_v41, 0.0 }
 0x9e3   : > { %v5767_v20 = vpop.eup %4352  ;;  %v2903_v21 = vmul.f32 1.0614054, %v5762_v11  ;;  %4368 = vpow2.f32 %v2995_v31  ;;  %v3001_v26 = vmul.f32 1.442695, %v2988_v10  ;;  %vm3030_vm12 = vcmp.ge.f32.partialorder %v5760_v63, 0.0 }
 0x9e4   : > { %v2905_v28 = vmul.f32 1.0614054, %v5767_v20  ;;  %v5772_v35 = vpop.eup %4354  ;;  %4370 = vpow2.f32 %v2993_v23  ;;  %v2990_v23 = vmul.f32 %v2982_v16, %v5765_v19  ;;  %v2854_v41 = vmul.f32 0.5, %v5752_v3 }
 0x9e5   : > { %v2911_v30 = vadd.f32 -1.4531521, %v2903_v21  ;;  %v2904_v43 = vmul.f32 1.0614054, %v5772_v35  ;;  %v5776_v44 = vpop.eup %4356  ;;  %4372 = vpow2.f32 %v2997_v39 }
 0x9e6   : > { %v2913_v37 = vadd.f32 -1.4531521, %v2905_v28  ;;  %v2906_v32 = vmul.f32 1.0614054, %v5776_v44  ;;  %v5782_v7 = vpop.eup %4358  ;;  %4374 = vpow2.f32 %v2999_v51 }
 0x9e7   : > { %v2919_v42 = vmul.f32 %v5762_v11, %v2911_v30  ;;  %v2912_v55 = vadd.f32 -1.4531521, %v2904_v43  ;;  %v5785_v15 = vpop.eup %4360  ;;  %v2907_v9 = vmul.f32 1.0614054, %v5782_v7  ;;  %4376 = vpow2.f32 %v3003_v5 }
 0x9e8   : > { %v2921_v45 = vmul.f32 %v5767_v20, %v2913_v37  ;;  %v2914_v62 = vadd.f32 -1.4531521, %v2906_v32  ;;  %v2909_v14 = vmul.f32 1.0614054, %v5785_v15  ;;  %4378 = vpow2.f32 %v3001_v26 }
 0x9e9   : > { %v2927_v48 = vadd.f32 1.4214138, %v2919_v42  ;;  %v2920_v1 = vmul.f32 %v5772_v35, %v2912_v55  ;;  %v2915_v33 = vadd.f32 -1.4531521, %v2907_v9  ;;  %v5793_v22 = vpop.eup %4362 }
 0x9ea   : > { %v2929_v50 = vadd.f32 1.4214138, %v2921_v45  ;;  %v2922_v8 = vmul.f32 %v5776_v44, %v2914_v62  ;;  %v2917_v28 = vadd.f32 -1.4531521, %v2909_v14  ;;  %v4365_v59 = vpop.eup %4364  ;;  %v2908_v43 = vmul.f32 1.0614054, %v5793_v22 }
 0x9eb   : > { %v2935_v60 = vmul.f32 %v5762_v11, %v2927_v48  ;;  %v2928_v24 = vadd.f32 1.4214138, %v2920_v1  ;;  %v2923_v37 = vmul.f32 %v5782_v7, %v2915_v33 }
 0x9ec   : > { %v2937_v0 = vmul.f32 %v5767_v20, %v2929_v50  ;;  %v2930_v21 = vadd.f32 1.4214138, %v2922_v8  ;;  %v2925_v42 = vmul.f32 %v5785_v15, %v2917_v28  ;;  %v5801_v39 = vpop.eup %4366  ;;  %v2916_v51 = vadd.f32 -1.4531521, %v2908_v43 }
 0x9ed   : > { %v2943_v4 = vadd.f32 -0.28449672, %v2935_v60  ;;  %v2936_v17 = vmul.f32 %v5772_v35, %v2928_v24  ;;  %v2931_v48 = vadd.f32 1.4214138, %v2923_v37  ;;  %v4369_v55 = vpop.eup %4368  ;;  %v2910_v60 = vmul.f32 1.0614054, %v5801_v39 }
 0x9ee   : > { %v2945_v13 = vadd.f32 -0.28449672, %v2937_v0  ;;  %v2938_v31 = vmul.f32 %v5776_v44, %v2930_v21  ;;  %v2933_v50 = vadd.f32 1.4214138, %v2925_v42  ;;  %v4371_v1 = vpop.eup %4370  ;;  %v2924_v24 = vmul.f32 %v5793_v22, %v2916_v51 }
 0x9ef   : > { %v2951_v12 = vmul.f32 %v5762_v11, %v2943_v4  ;;  %v2944_v30 = vadd.f32 -0.28449672, %v2936_v17  ;;  %v2939_v5 = vmul.f32 %v5782_v7, %v2931_v48  ;;  %v4373_v10 = vpop.eup %4372  ;;  %v2918_v8 = vadd.f32 -1.4531521, %v2910_v60 }
 0x9f0   : > { %v2953_v25 = vmul.f32 %v5767_v20, %v2945_v13  ;;  %v2946_v46 = vadd.f32 -0.28449672, %v2938_v31  ;;  %v2941_v4 = vmul.f32 %v5785_v15, %v2933_v50  ;;  %v4375_v14 = vpop.eup %4374  ;;  %v3005_v28 = vmul.f32 1.442695, %v2990_v23 }
 0x9f1   : > { %v2959_v29 = vadd.f32 0.2548296, %v2951_v12  ;;  %v2952_v36 = vmul.f32 %v5772_v35, %v2944_v30  ;;  %v2947_v13 = vadd.f32 -0.28449672, %v2939_v5  ;;  %v2932_v12 = vadd.f32 1.4214138, %v2924_v24 }
 0x9f2   : > { %v2961_v40 = vadd.f32 0.2548296, %v2953_v25  ;;  %v2954_v19 = vmul.f32 %v5776_v44, %v2946_v46  ;;  %v2949_v16 = vadd.f32 -0.28449672, %v2941_v4  ;;  %v2926_v17 = vmul.f32 %v5801_v39, %v2918_v8 }
 0x9f3   : > { %v2967_v45 = vmul.f32 %v5762_v11, %v2959_v29  ;;  %v2960_v0 = vadd.f32 0.2548296, %v2952_v36  ;;  %v2955_v25 = vmul.f32 %v5782_v7, %v2947_v13  ;;  %v4377_v29 = vpop.eup %4376  ;;  %v2940_v37 = vmul.f32 %v5793_v22, %v2932_v12 }
 0x9f4   : > { %v2969_v32 = vmul.f32 %v5767_v20, %v2961_v40  ;;  %v2962_v9 = vadd.f32 0.2548296, %v2954_v19  ;;  %v2957_v31 = vmul.f32 %v5785_v15, %v2949_v16  ;;  %v2847_v42 = vmul.f32 0.5, %v5715_v34 }
 0x9f5   : > { %v3007_v62 = vmul.f32 %v4365_v59, %v2967_v45  ;;  %v2968_v20 = vmul.f32 %v5772_v35, %v2960_v0  ;;  %v2934_v35 = vadd.f32 1.4214138, %v2926_v17  ;;  %v2963_v40 = vadd.f32 0.2548296, %v2955_v25  ;;  %v4379_v0 = vpop.eup %4378 }
 0x9f6   : > { %v3009_v11 = vmul.f32 %v4369_v55, %v2969_v32  ;;  %v2970_v59 = vmul.f32 %v5776_v44, %v2962_v9  ;;  %v2965_v26 = vadd.f32 0.2548296, %v2957_v31  ;;  %v2948_v43 = vadd.f32 -0.28449672, %v2940_v37 }
 0x9f7   : > { %v3015_v21 = vsub.f32 1.0, %v3007_v62  ;;  %v3008_v30 = vmul.f32 %v4371_v1, %v2968_v20  ;;  %v2971_v46 = vmul.f32 %v5782_v7, %v2963_v40  ;;  %4380 = vpow2.f32 %v3005_v28 }
 0x9f8   : > { %v3017_v33 = vsub.f32 1.0, %v3009_v11  ;;  %v2973_v48 = vmul.f32 %v5785_v15, %v2965_v26  ;;  %v2956_v55 = vmul.f32 %v5793_v22, %v2948_v43  ;;  %v2942_v32 = vmul.f32 %v5801_v39, %v2934_v35 }
 0x9f9   : > { %v3031_v45 = vsub.f32 0.0, %v3015_v21  ;;  %v3016_v23 = vsub.f32 1.0, %v3008_v30  ;;  %v2849_v50 = vmul.f32 0.5, %v5717_v27  ;;  %v2848_v44 = vmul.f32 0.5, %v5719_v18 }
 0x9fa   : > { %v3033_v36 = vsub.f32 0.0, %v3017_v33  ;;  %v3010_v51 = vmul.f32 %v4373_v10, %v2970_v59  ;;  %v3011_v34 = vmul.f32 %v4375_v14, %v2971_v46  ;;  %v3013_v60 = vmul.f32 %v4377_v29, %v2973_v48 }
 0x9fb   : > { %v2964_v1 = vadd.f32 0.2548296, %v2956_v55  ;;  %v2950_v62 = vadd.f32 -0.28449672, %v2942_v32  ;;  %v3039_v7 = vsel %vm3023_vm5, %v3015_v21, %v3031_v45  ;;  %v3032_v5 = vsub.f32 0.0, %v3016_v23 }
 0x9fc   : > { %v3019_v15 = vsub.f32 1.0, %v3011_v34  ;;  %v3041_v19 = vsel %vm3025_vm6, %v3017_v33, %v3033_v36  ;;  %v3021_v11 = vsub.f32 1.0, %v3013_v60  ;;  %v3018_v18 = vsub.f32 1.0, %v3010_v51 }
 0x9fd   : > { %v2972_v27 = vmul.f32 %v5793_v22, %v2964_v1  ;;  %v2851_v10 = vmul.f32 0.5, %v5739_v52  ;;  %v2958_v54 = vmul.f32 %v5801_v39, %v2950_v62  ;;  %v3047_v24 = vadd.f32 1.0, %v3039_v7 }
 0x9fe   : > { %v3035_v4 = vsub.f32 0.0, %v3019_v15  ;;  %v3037_v8 = vsub.f32 0.0, %v3021_v11  ;;  %v3049_v20 = vadd.f32 1.0, %v3041_v19  ;;  %v3040_v14 = vsel %vm3024_vm7, %v3016_v23, %v3032_v5  ;;  %v3893_v19 = vld [vmem:[%s833_s25] ss:$0 sm:$0xff] }
 0x9ff   : > { %v3012_v56 = vmul.f32 %v4379_v0, %v2972_v27  ;;  %v2966_v13 = vadd.f32 0.2548296, %v2958_v54  ;;  %v3034_v17 = vsub.f32 0.0, %v3018_v18  ;;  %v2853_v21 = vmul.f32 0.5, %v5741_v53 }
 0xa00   : > { %v3043_v9 = vsel %vm3027_vm8, %v3019_v15, %v3035_v4  ;;  %v3045_v16 = vsel %vm3029_vm9, %v3021_v11, %v3037_v8  ;;  %v3055_v25 = vmul.f32 %v3047_v24, %v2847_v42  ;;  %v3057_v2 = vmul.f32 %v3049_v20, %v2849_v50 }
 0xa01   : > { %v3051_v22 = vadd.f32 1.0, %v3043_v9  ;;  %v3020_v12 = vsub.f32 1.0, %v3012_v56  ;;  %v4381_v52 = vpop.eup %4380  ;;  %v3053_v33 = vadd.f32 1.0, %v3045_v16  ;;  %v2974_v61 = vmul.f32 %v5801_v39, %v2966_v13 }
 0xa02   : > { %v3048_v30 = vadd.f32 1.0, %v3040_v14  ;;  %v2852_v35 = vmul.f32 0.5, %v5746_v6  ;;  %v3042_v40 = vsel %vm3026_vm11, %v3018_v18, %v3034_v17  ;;  %v2850_v23 = vmul.f32 0.5, %v5721_v38  ;;  %v3895_v17 = vld [vmem:[%s6059_s21] ss:$0 sm:$0xff] (!%p3894_p7) }
 0xa03   : > { %v3059_v28 = vmul.f32 %v3051_v22, %v2851_v10  ;;  %v3036_v29 = vsub.f32 0.0, %v3020_v12  ;;  %v3061_v31 = vmul.f32 %v3053_v33, %v2853_v21  ;;  %v3014_v57 = vmul.f32 %v4381_v52, %v2974_v61  ;;  %v3896_v33 = vld [vmem:[%s6060_s29] ss:$0 sm:$0xff] (!%p3894_p7) }
 0xa04   : > { %v3056_v39 = vmul.f32 %v3048_v30, %v2848_v44  ;;  %v3050_v36 = vadd.f32 1.0, %v3042_v40 }
 0xa05   : > { %v3063_v37 = vpack.c.bf16 %v3059_v28, %v3055_v25  ;;  %v3044_v59 = vsel %vm3028_vm10, %v3020_v12, %v3036_v29  ;;  %v3065_v53 = vpack.c.bf16 %v3061_v31, %v3057_v2  ;;  %v3022_v43 = vsub.f32 1.0, %v3014_v57 }
 0xa06   : > { %v3052_v26 = vadd.f32 1.0, %v3044_v59  ;;  %v3058_v6 = vmul.f32 %v3050_v36, %v2850_v23 }
 0xa07   : > { %v3038_v45 = vsub.f32 0.0, %v3022_v43 }
 0xa08   : > { %v3060_v42 = vmul.f32 %v3052_v26, %v2852_v35 }
 0xa09   : > { %v3046_v58 = vsel %vm3030_vm12, %v3022_v43, %v3038_v45 }
 0xa0a   : > { %v3064_v46 = vpack.c.bf16 %v3060_v42, %v3056_v39  ;;  %v3054_v48 = vadd.f32 1.0, %v3046_v58 }
 0xa0c   : > { %3355 = vmatprep.mubr.bf16.mxu1 %v3064_v46  ;;  %v3062_v55 = vmul.f32 %v3054_v48, %v2854_v41 }
 0xa0d   : > { %3356 = vmatmul.mubr.bf16.vlgmr.msra.gmra.mrb[24].mxu1 %v3063_v37 }
 0xa0e   : > { %v3066_v32 = vpack.c.bf16 %v3062_v55, %v3058_v6 }
 0xa10   : > { %3396 = vmatprep.mubr.bf16.mxu0 %v3066_v32 }
 0xa11   : > { %3397 = vmatmul.mubr.bf16.vlgmr.msra.gmra.mrb[12].mxu0 %v3065_v53 }
 0xae0   : > { %v3949_v50 = vpop.f32.mrb[24].mxu1 }
 0xae1   : > { %v3950_v44 = vpop.f32.mrb[25].mxu1 }
 0xae2   : > { %v3951_v51 = vadd.f32 %v3950_v44, %v3949_v50  ;;  %v3952_v34 = vpop.f32.mrb[26].mxu1 }
 0xae3   : > { %v3953_v63 = vpop.f32.mrb[27].mxu1 }
 0xae4   : > { %v3954_v60 = vadd.f32 %v3953_v63, %v3952_v34  ;;  %v3971_v1 = vpop.f32.mrb[12].mxu0 }
 0xae5   : > { %v3972_v62 = vpop.f32.mrb[13].mxu0 }
 0xae6   : > { %v3973_v38 = vadd.f32 %v3972_v62, %v3971_v1  ;;  %v3974_v7 = vpop.f32.mrb[14].mxu0 }
 0xae7   : > { %v3975_v3 = vpop.f32.mrb[15].mxu0 }
 0xae8   : > { %v3399_v15 = vadd.f32 %v3973_v38, %v3951_v51  ;;  %v3976_v0 = vadd.f32 %v3975_v3, %v3974_v7 }
 0xaea   : > { %v3405_v5 = vadd.f32 %v3399_v15, %v5615_v47  ;;  %v3402_v11 = vadd.f32 %v3976_v0, %v3954_v60  ;;  %3421 = sbr.rel (%p3894_p7) target bundleno = 3114 (0xc2a), region = 116 }
 0xaec   : > { %v3414_v27 = vadd.f32 %v3893_v19, %v3405_v5  ;;  %v3406_v18 = vadd.f32 %v3402_v11, %v5618_v49 }
 0xaee   : > { %3416 = vst [vmem:[#allocation2] sm:$0xff] %v3414_v27  ;;  %v3415_v10 = vadd.f32 %v3893_v19, %v3406_v18  ;;  %3424 = vadd.xlane.f32.xlu0 (!%p3894_p7), %v3414_v27 }
 0xaf0   : > { %3417 = vst [vmem:[#allocation2 + $0x8] sm:$0xff] %v3415_v10 }
 0xaf2   : > { %3426 = vadd.xlane.f32.xlu0 %v3415_v10 }
 0xb7b   : > { %v3425_v4 = vpop.xlane.xlu0 %3424 }
 0xb7c   : > { %v3428_v54 = vmul.f32 0.0078125, %v3425_v4 }
 0xb7e   : > { %v3430_v24 = vsub.f32 %v3414_v27, %v3428_v54 }
 0xb7f   : > { %v3427_v8 = vpop.xlane.xlu0 %3426 }
 0xb80   : > { %v3429_v56 = vmul.f32 0.0078125, %v3427_v8  ;;  %v3432_v20 = vmul.f32 %v3430_v24, %v3430_v24 }
 0xb82   : > { %v3431_v9 = vsub.f32 %v3415_v10, %v3429_v56  ;;  %3434 = vadd.xlane.f32.xlu1 %v3432_v20 }
 0xb84   : > { %v3433_v47 = vmul.f32 %v3431_v9, %v3431_v9 }
 0xb86   : > { %3436 = vadd.xlane.f32.xlu1 %v3433_v47 }
 0xc0f   : > { %v3435_v13 = vpop.xlane.xlu1 %3434 }
 0xc10   : > { %v3438_v49 = vmul.f32 0.0078125, %v3435_v13 }
 0xc12   : > { %v3440_v14 = vadd.f32 1e-05, %v3438_v49 }
 0xc13   : > { %v3437_v22 = vpop.xlane.xlu1 %3436 }
 0xc14   : > { %4384 = vrsqrt.f32 %v3440_v14  ;;  %v3439_v16 = vmul.f32 0.0078125, %v3437_v22 }
 0xc16   : > { %v3441_v12 = vadd.f32 1e-05, %v3439_v16 }
 0xc18   : > { %4386 = vrsqrt.f32 %v3441_v12 }
 0xc1e   : > { %v4385_v52 = vpop.eup %4384 }
 0xc1f   : > { %v3444_v21 = vmul.f32 %v4385_v52, %v3430_v24 }
 0xc21   : > { %v3452_v61 = vmul.f32 %v3895_v17, %v3444_v21 }
 0xc22   : > { %v4387_v25 = vpop.eup %4386 }
 0xc23   : > { %v3460_v28 = vadd.f32 %v3896_v33, %v3452_v61  ;;  %v3445_v29 = vmul.f32 %v4387_v25, %v3431_v9 }
 0xc25   : > { %3462 = vst [vmem:[%s5312_s4] sm:$0xff] %v3460_v28  ;;  %v3453_v2 = vmul.f32 %v3895_v17, %v3445_v29 }
 0xc27   : > { %v3461_v30 = vadd.f32 %v3896_v33, %v3453_v2 }
 0xc29   : > { %3463 = vst [vmem:[%s5312_s4 + $0x8] sm:$0xff] %v3461_v30 }
 0xc2a PF: > { %s6061_s15 = sld [smem:[#allocation27_spill]]  ;;  %s6062_s12 = sld [smem:[#allocation36_spill]] }
 0xc2b   : > { %s6063_s19 = sld [smem:[#allocation54_spill]]  ;;  %s3478_s22 = sshll.u32 %s5312_s4, 4  ;;  %s5865_s22 = int_to_ptr.vmem [resolvable:$true] %s3478_s22 }
 0xc2c   : > { %s3465_s11 = scalar_lea.sflag [#allocation5], %s5237_s20  ;;  %s4598_s26 = scalar_lea.vmem %s5865_s22, 256 }
 0xc2d   : > { %p4599_p10 = scmp.ne.s32.totalorder %s5865_s22, %s4598_s26  ;;  %s4755_s28 = smov [#allocation15]  }
 0xc2e   : > { %s4602_s30 = sshll.u32 %s4755_s28, 4  ;;  %s4603_s30 = int_to_ptr.vmem [resolvable:$false] %s4602_s30 }
 0xc2f   : > { %s4604_s8 = scalar_lea.vmem %s4603_s30, 512  ;;  %p4605_p6 = scmp.lt.s32.totalorder %s5865_s22, %s4603_s30 }
 0xc30   : > { %s3906_s7 = sshll.u32 %s6061_s15, 8  ;;  %p6065_p1 = scmp.ne.s32.totalorder %s6062_s12, 0 }
 0xc31   : > { %s6064_s2 = smov %s6063_s19  ;;  %s5862_s23 = scalar_lea.hbm %s6063_s19, %s3906_s7 }
 0xc32   : > { %p4600_p5 = pnand %p4599_p10, %p6065_p1  ;;  %p4606_p3 = scmp.lt.s32.totalorder %s4604_s8, %s4598_s26 }
 0xc34   : > { %p4601_p2 = pneg %p4600_p5  ;;  %p4607_p13 = por %p4606_p3, %p4605_p6 }
 0xc36   : > { %p4608_p4 = pnand %p4607_p13, %p4601_p2 }
 0xc38   : > { %4611 = shalt.err (!%p4608_p4)
}
 0xc39   : > { %s4612_s4 = scalar_lea.hbm %s5862_s23, 256  ;;  %s4616_s27 = scalar_lea.hbm %s6064_s2, 512 }
 0xc3a   : > { %p4613_p12 = scmp.ne.s32.totalorder %s5862_s23, %s4612_s4  ;;  %p4617_p9 = scmp.lt.u32.totalorder %s5862_s23, %s6064_s2 }
 0xc3b   : > { %p4618_p0 = scmp.lt.u32.totalorder %s4616_s27, %s4612_s4  ;;  %p4620_p10 = scmp.lt.u32.totalorder %s4612_s4, %s5862_s23 }
 0xc3c   : > { %p4614_p8 = pnand %p4613_p12, %p6065_p1 }
 0xc3d   : > { %p4619_p7 = por %p4618_p0, %p4617_p9 }
 0xc3e   : > { %p4615_p11 = pneg %p4614_p8 }
 0xc3f   : > { %p4621_p5 = por %p4620_p10, %p4619_p7 }
 0xc41   : > { %p4622_p2 = pnand %p4621_p5, %p4615_p11 }
 0xc43   : > { %4625 = shalt.err (!%p4622_p2)
}
 0xc44   : > { %s4756_s18 = smov 128   ;;  %s4757_s16 = smov 8  }
 0xc45   : > { %4059 = dma.vmem_to_hbm [thread:$0]  (%p6065_p1), %s5865_s22, 256, %s5862_s23, %s3465_s11, %s4756_s18, %s4756_s18, %s4757_s16  }
 0xc46 PF: > { %s6066_s3 = sld [smem:[#allocation30_spill]]  ;;  %s6067_s9 = sld [smem:[#allocation23_spill]] }
 0xc47   : > { %s6068_s1 = sld [smem:[#allocation37_spill]] }
 0xc4c   : > { %p4088_p6 = scmp.ge.s32.totalorder %s6066_s3, 2  ;;  %s3493_s6 = sand.u32 1, %s6067_s9  }
 0xc4d   : > { %p6069_p3 = scmp.ne.s32.totalorder %s6068_s1, 0  ;;  %s3494_s21 = scalar_lea.sflag [#allocation5], %s3493_s6 }
 0xc4f   : > { %p4084_p13 = pnand %p4088_p6, %p6069_p3 }
 0xc51   : > { %4687 = dma.done.wait (!%p4084_p13), %s3494_s21, 256  }
 0xc52   : > { %4689 = vsyncadd (!%p4084_p13), %s3494_s21, 4294967040  ;;  %s40_s28 = sadd.s32 1, %s6066_s3   ;;  %s6070_s18 = sld [smem:[#allocation21_spill]] }
 0xc53   : > { %p37_p4 = scmp.ge.s32.totalorder %s40_s28, 6   ;;  %s6071_s19 = sld [smem:[#allocation22_spill]] }
 0xc54   : > { %s6072_s20 = sld [smem:[#allocation33_spill]]  ;;  %s6073_s21 = sld [smem:[#allocation24_spill]] }
 0xc55   : > { %s6074_s22 = sld [smem:[#allocation25_spill]]  ;;  %s6075_s23 = sld [smem:[#allocation38_spill]] }
 0xc56   : > { %s6076_s24 = sld [smem:[#allocation28_spill]]  ;;  %s6077_s25 = sld [smem:[#allocation29_spill]] }
 0xc57   : > { %s6078_s26 = sld [smem:[#allocation31_spill]]  ;;  %s6079_s27 = sld [smem:[#allocation35_spill]] }
 0xc58   :  { %39 = sbr.rel (!%p37_p4) target bundleno = 32 (0x20), region = 223 }
 0xc5f   :  { %3499 = vsyncpa [#allocation4], 1 }
 0xc60   :  { %3501 = vsyncpa [#allocation4 + $0x1], 1 }
 0xc61   :  { %3502 = vsyncpa [#allocation7], 1 }
 0xc62   :  { %3504 = vsyncpa [#allocation7 + $0x1], 1 }
 0xc63   :  { %3505 = vsyncpa [#allocation10], 1 }
 0xc64   :  { %3507 = vsyncpa [#allocation10 + $0x1], 1 }
 0xc65   :  { %3508 = vsyncpa [#allocation13], 1 }
 0xc66   :  { %3510 = vsyncpa [#allocation13 + $0x1], 1 }
 0xc67   :  { %3511 = vsyncpa [#allocation5], 1 }
 0xc68   :  { %3513 = vsyncpa [#allocation5 + $0x1], 1 }

</bundles_post_ra>
